<compile_context>
chip_gen: v7x
topology: tpu7x:2x2x1
jax: 0.10.0
libtpu: 0.0.40
codegen_flags: <defaults>
</compile_context>

<pallas_src>
import functools

import numpy as np
import jax
import jax.numpy as jnp
from jax import lax
from jax.experimental import pallas as pl
from jax.experimental.pallas import tpu as pltpu

_EPS = 1e-5


# ----------------------------- fused Pallas kernel ---------------------------


def _fused_forward_kernel(x_ref, m_ref, w1_ref, s1_ref, t1_ref,
                          w2_ref, s2_ref, t2_ref, p2_ref, ga_ref,
                          wfc_ref, bfc_ref, o_ref,
                          xcol1_ref, y1p_ref, xcol2_ref,
                          *, C_IN, C1, SL, WRK, TOT, shifts):
  """Whole network forward for the whole batch (channels on sublanes,
  batched padded-spatial on lanes).

  x_ref    : (C_IN, TOT)      pre-padded input, data at lanes [SL, SL+WRK)
  m_ref    : (1, WRK)         1.0 at interior pixels, 0.0 at pad-ring columns
  w1_ref   : (C1, 9*C_IN)     conv1 weights, im2col-flattened
  s1/t1    : (C1, 1)          BN1 scale / (conv1 bias + BN1 shift) folded
  w2_ref   : (C2, 9*C1)       conv2 weights, im2col-flattened
  s2/t2    : (C2, 1)          BN2 scale / (conv2 bias + BN2 shift) folded
  p2_ref   : (WRK, NPOOL)     2x2 avg-pool selection matrix (0 / 0.25)
  ga_ref   : (NPOOL, N)       global average pool matrix (0 / 1/(Ho*Wo))
  wfc_ref  : (OUT, C2)        final Linear weight, transposed
  bfc_ref  : (OUT, 1)         final Linear bias
  o_ref    : (OUT, N)         logits (transposed); wrapper emits (N, OUT)
  scratch  : xcol1 (9*C_IN, WRK), y1p (C1, TOT), xcol2 (9*C1, WRK)  -- VMEM
  """
  # ---- conv1: im2col via 9 static lane-offset slices of the pre-padded input
  for t, s in enumerate(shifts):
    xcol1_ref[t * C_IN:(t + 1) * C_IN, :] = x_ref[:, SL + s:SL + s + WRK]
  y1 = jnp.dot(w1_ref[...], xcol1_ref[...],
               preferred_element_type=jnp.float32)            # (C1, WRK)
  # BN1 (conv1 bias folded) + ReLU; the interior mask zeroes the pad-ring
  # columns so conv2 sees exact zero padding.
  y1 = jnp.maximum(y1 * s1_ref[...] + t1_ref[...], 0.0) * m_ref[...]

  # ---- re-pad activation into VMEM scratch (slack zeroed; single grid step)
  y1p_ref[...] = jnp.zeros((C1, TOT), jnp.float32)
  y1p_ref[:, SL:SL + WRK] = y1

  # ---- conv2: same im2col construction on the padded activation
  for t, s in enumerate(shifts):
    xcol2_ref[t * C1:(t + 1) * C1, :] = y1p_ref[:, SL + s:SL + s + WRK]
  y2 = jnp.dot(w2_ref[...], xcol2_ref[...],
               preferred_element_type=jnp.float32)            # (C2, WRK)

  # ---- AvgPool2d(2,2): one matmul with the wrapper-built selection matrix
  pooled = jnp.dot(y2, p2_ref[...],
                   preferred_element_type=jnp.float32)        # (C2, NPOOL)

  # ---- BN2 (+ conv2 bias, folded through the linear pool) + ReLU
  a = jnp.maximum(pooled * s2_ref[...] + t2_ref[...], 0.0)

  # ---- AdaptiveAvgPool2d((1,1)) + Linear(C2 -> OUT), emitted as (OUT, N)
  g = jnp.dot(a, ga_ref[...], preferred_element_type=jnp.float32)   # (C2, N)
  o_ref[...] = jnp.dot(wfc_ref[...], g,
                       preferred_element_type=jnp.float32) + bfc_ref[...]


# ----------------------------- wrapper / full forward ------------------------


def forward(x_nchw, params):
  """Pallas forward of BasisEquivariantNet ('conv' config). Input is NCHW."""
  x = x_nchw.astype(jnp.float32)
  N, C_IN, H, W = x.shape
  assert H % 2 == 0 and W % 2 == 0, "BN2/bias fold through AvgPool needs even H,W"

  c1p, b1 = params["conv1"], params["bn1"]
  c2p, b2 = params["conv2"], params["bn2"]
  fc = params["fc"]
  C1 = c1p["w"].shape[-1]
  C2 = c2p["w"].shape[-1]
  OUT = fc["w"].shape[-1]

  Hp, Wp = H + 2, W + 2
  Ho, Wo = H // 2, W // 2
  WRK = N * Hp * Wp                     # batched padded-spatial (lane axis)
  NPOOL = N * Ho * Wo
  SL = Wp + 1                           # lane slack >= |max tap shift|
  TOT = ((WRK + 2 * SL + 127) // 128) * 128
  shifts = tuple((dy - 1) * Wp + (dx - 1) for dy in range(3) for dx in range(3))

  # Fold conv bias + eval-mode BatchNorm into per-channel scale/shift.
  s1 = b1["gamma"] / jnp.sqrt(b1["var"] + _EPS)
  t1 = (c1p["b"] - b1["mean"]) * s1 + b1["beta"]
  # conv2 -> avgpool -> BN2: pool weights per output sum to 1, so the affine
  # (and conv2 bias) commute with the pool.
  s2 = b2["gamma"] / jnp.sqrt(b2["var"] + _EPS)
  t2 = (c2p["b"] - b2["mean"]) * s2 + b2["beta"]

  # HWIO (3,3,Cin,Cout) -> (Cout, 9*Cin); column index = (dy*3+dx)*Cin + cin,
  # matching the in-kernel xcol row construction.
  w1m = jnp.transpose(c1p["w"], (3, 0, 1, 2)).reshape(C1, 9 * C_IN)
  w2m = jnp.transpose(c2p["w"], (3, 0, 1, 2)).reshape(C2, 9 * C1)
  wfcT = jnp.transpose(fc["w"])                         # (OUT, C2)
  bfc = fc["b"].reshape(OUT, 1)

  # Pre-padded, lane-flattened input: (C_IN, TOT) with zeros in ring + slack.
  xpad = jnp.pad(x, ((0, 0), (0, 0), (1, 1), (1, 1)))   # (N, C, Hp, Wp)
  xflat = jnp.transpose(xpad, (1, 0, 2, 3)).reshape(C_IN, WRK)
  xflat = jnp.pad(xflat, ((0, 0), (SL, TOT - WRK - SL)))

  # Compile-time constants (numpy at trace time): interior mask, 2x2 avg-pool
  # selection matrix, global-average matrix.
  j = np.arange(WRK)
  n_idx = j // (Hp * Wp)
  r = j % (Hp * Wp)
  ph = r // Wp
  pw = r % Wp
  interior = (ph >= 1) & (ph <= H) & (pw >= 1) & (pw <= W)
  hh = np.clip(ph - 1, 0, H - 1)
  ww = np.clip(pw - 1, 0, W - 1)
  q = n_idx * (Ho * Wo) + (hh // 2) * Wo + (ww // 2)
  pool2 = np.where(interior[:, None] & (q[:, None] == np.arange(NPOOL)[None, :]),
                   np.float32(0.25), np.float32(0.0)).astype(np.float32)
  mask = interior.astype(np.float32)[None, :]                       # (1, WRK)
  gavg = np.where(np.arange(NPOOL)[:, None] // (Ho * Wo)
                  == np.arange(N)[None, :],
                  np.float32(1.0 / (Ho * Wo)), np.float32(0.0)).astype(np.float32)

  kern = functools.partial(_fused_forward_kernel, C_IN=C_IN, C1=C1,
                           SL=SL, WRK=WRK, TOT=TOT, shifts=shifts)

  logits_t = pl.pallas_call(
      kern,
      out_shape=jax.ShapeDtypeStruct((OUT, N), jnp.float32),
      grid=(1,),
      in_specs=[
          pl.BlockSpec((C_IN, TOT), lambda i: (0, 0)),        # padded input
          pl.BlockSpec((1, WRK), lambda i: (0, 0)),           # interior mask
          pl.BlockSpec((C1, 9 * C_IN), lambda i: (0, 0)),     # w1
          pl.BlockSpec((C1, 1), lambda i: (0, 0)),            # scale1
          pl.BlockSpec((C1, 1), lambda i: (0, 0)),            # shift1
          pl.BlockSpec((C2, 9 * C1), lambda i: (0, 0)),       # w2
          pl.BlockSpec((C2, 1), lambda i: (0, 0)),            # scale2
          pl.BlockSpec((C2, 1), lambda i: (0, 0)),            # shift2
          pl.BlockSpec((WRK, NPOOL), lambda i: (0, 0)),       # 2x2 pool matrix
          pl.BlockSpec((NPOOL, N), lambda i: (0, 0)),         # global-avg matrix
          pl.BlockSpec((OUT, C2), lambda i: (0, 0)),          # fc weight (T)
          pl.BlockSpec((OUT, 1), lambda i: (0, 0)),           # fc bias
      ],
      out_specs=pl.BlockSpec((OUT, N), lambda i: (0, 0)),
      scratch_shapes=[
          pltpu.VMEM((9 * C_IN, WRK), jnp.float32),           # im2col layer 1
          pltpu.VMEM((C1, TOT), jnp.float32),                 # padded act 1
          pltpu.VMEM((9 * C1, WRK), jnp.float32),             # im2col layer 2
      ],
      compiler_params=pltpu.CompilerParams(
          dimension_semantics=("arbitrary",)),
  )(xflat, jnp.asarray(mask), w1m, s1.reshape(C1, 1), t1.reshape(C1, 1),
    w2m, s2.reshape(C2, 1), t2.reshape(C2, 1),
    jnp.asarray(pool2), jnp.asarray(gavg), wfcT, bfc)

  total_ae_loss = jnp.zeros((1,), jnp.float32)
  return logits_t.T, total_ae_loss


# ----------------------------- reference (pure JAX) --------------------------


def ref_forward(x_nchw, params):
  x = jnp.transpose(x_nchw, (0, 2, 3, 1)).astype(jnp.float32)

  def conv(x, w, b):
    return lax.conv_general_dilated(
        x, w, (1, 1), "SAME",
        dimension_numbers=("NHWC", "HWIO", "NHWC")) + b

  def bn(x, p):
    return (x - p["mean"]) / jnp.sqrt(p["var"] + _EPS) * p["gamma"] + p["beta"]

  y = jax.nn.relu(bn(conv(x, params["conv1"]["w"], params["conv1"]["b"]),
                     params["bn1"]))
  y = conv(y, params["conv2"]["w"], params["conv2"]["b"])
  N, H, W, C = y.shape
  y = y.reshape(N, H // 2, 2, W // 2, 2, C).mean(axis=(2, 4))
  y = jax.nn.relu(bn(y, params["bn2"]))
  pooled = y.mean(axis=(1, 2))
  return pooled @ params["fc"]["w"] + params["fc"]["b"]


# ----------------------------- params ---------------------------------------


def init_params(key, cin=4, c1=8, c2=16, out=10):
  ks = jax.random.split(key, 14)

  def conv_w(k, ci, co):
    return jax.random.normal(k, (3, 3, ci, co), jnp.float32) * (
        1.0 / (9.0 * ci) ** 0.5)

  def bn_params(k0, k1, k2, k3, c):
    return {
        "gamma": 1.0 + 0.1 * jax.random.normal(k0, (c,), jnp.float32),
        "beta": 0.1 * jax.random.normal(k1, (c,), jnp.float32),
        "mean": 0.05 * jax.random.normal(k2, (c,), jnp.float32),
        "var": 1.0 + 0.1 * jnp.abs(jax.random.normal(k3, (c,), jnp.float32)),
    }

  return {
      "conv1": {"w": conv_w(ks[0], cin, c1),
                "b": 0.1 * jax.random.normal(ks[1], (c1,), jnp.float32)},
      "bn1": bn_params(ks[2], ks[3], ks[4], ks[5], c1),
      "conv2": {"w": conv_w(ks[6], c1, c2),
                "b": 0.1 * jax.random.normal(ks[7], (c2,), jnp.float32)},
      "bn2": bn_params(ks[8], ks[9], ks[10], ks[11], c2),
      "fc": {"w": jax.random.normal(ks[12], (c2, out), jnp.float32) *
                  (1.0 / c2 ** 0.5),
             "b": 0.1 * jax.random.normal(ks[13], (out,), jnp.float32)},
  }


# ----------------------------- main ------------------------------------------

if __name__ == "__main__":
  key = jax.random.PRNGKey(0)
  kx, kp = jax.random.split(key)
  # PyTorch-style NCHW input: batch=2, channels=4, spatial=16x16.
  x = jax.random.normal(kx, (2, 4, 16, 16), jnp.float32)
  params = init_params(kp)

  logits, ae_loss = jax.jit(forward)(x, params)
  jax.block_until_ready(logits)

  ref = ref_forward(x, params)
  assert logits.shape == (2, 10), logits.shape
  assert ae_loss.shape == (1,), ae_loss.shape
  assert jnp.allclose(logits, ref, rtol=1e-4, atol=1e-4), (logits, ref)

  print("KERNEL_OK")
</pallas_src>

<mosaic_0001>
module attributes {stable_mosaic.version = 11 : i64} {
  func.func @_fused_forward_kernel(%arg0: i32, %arg1: memref<4x768xf32, #tpu.memory_space<vmem>>, %arg2: memref<1x648xf32, #tpu.memory_space<vmem>>, %arg3: memref<8x36xf32, #tpu.memory_space<vmem>>, %arg4: memref<8x1xf32, #tpu.memory_space<vmem>>, %arg5: memref<8x1xf32, #tpu.memory_space<vmem>>, %arg6: memref<16x72xf32, #tpu.memory_space<vmem>>, %arg7: memref<16x1xf32, #tpu.memory_space<vmem>>, %arg8: memref<16x1xf32, #tpu.memory_space<vmem>>, %arg9: memref<648x128xf32, #tpu.memory_space<vmem>>, %arg10: memref<128x2xf32, #tpu.memory_space<vmem>>, %arg11: memref<10x16xf32, #tpu.memory_space<vmem>>, %arg12: memref<10x1xf32, #tpu.memory_space<vmem>>, %arg13: memref<10x2xf32, #tpu.memory_space<vmem>>, %arg14: memref<36x648xf32, #tpu.memory_space<vmem>>, %arg15: memref<8x768xf32, #tpu.memory_space<vmem>>, %arg16: memref<72x648xf32, #tpu.memory_space<vmem>>) attributes {dimension_semantics = [#tpu.dimension_semantics<arbitrary>], iteration_bounds = array<i64: 1>, scalar_prefetch = 0 : i64, scratch_operands = 3 : i64, tpu.core_type = #tpu.core_type<tc>, window_params = [{pipeline_mode = #tpu.pipeline_mode<synchronous>, transform_indices = @transform_0, window_bounds = array<i64: 4, 768>}, {pipeline_mode = #tpu.pipeline_mode<synchronous>, transform_indices = @transform_1, window_bounds = array<i64: 1, 648>}, {pipeline_mode = #tpu.pipeline_mode<synchronous>, transform_indices = @transform_2, window_bounds = array<i64: 8, 36>}, {pipeline_mode = #tpu.pipeline_mode<synchronous>, transform_indices = @transform_3, window_bounds = array<i64: 8, 1>}, {pipeline_mode = #tpu.pipeline_mode<synchronous>, transform_indices = @transform_4, window_bounds = array<i64: 8, 1>}, {pipeline_mode = #tpu.pipeline_mode<synchronous>, transform_indices = @transform_5, window_bounds = array<i64: 16, 72>}, {pipeline_mode = #tpu.pipeline_mode<synchronous>, transform_indices = @transform_6, window_bounds = array<i64: 16, 1>}, {pipeline_mode = #tpu.pipeline_mode<synchronous>, transform_indices = @transform_7, window_bounds = array<i64: 16, 1>}, {pipeline_mode = #tpu.pipeline_mode<synchronous>, transform_indices = @transform_8, window_bounds = array<i64: 648, 128>}, {pipeline_mode = #tpu.pipeline_mode<synchronous>, transform_indices = @transform_9, window_bounds = array<i64: 128, 2>}, {pipeline_mode = #tpu.pipeline_mode<synchronous>, transform_indices = @transform_10, window_bounds = array<i64: 10, 16>}, {pipeline_mode = #tpu.pipeline_mode<synchronous>, transform_indices = @transform_11, window_bounds = array<i64: 10, 1>}, {pipeline_mode = #tpu.pipeline_mode<synchronous>, transform_indices = @transform_12, window_bounds = array<i64: 10, 2>}]} {
    %c0 = arith.constant 0 : index
    %c0_0 = arith.constant 0 : index
    %0 = vector.load %arg1[%c0, %c0_0] : memref<4x768xf32, #tpu.memory_space<vmem>>, vector<4x648xf32>
    %c0_1 = arith.constant 0 : index
    %c0_2 = arith.constant 0 : index
    %1 = vector.load %arg14[%c0_1, %c0_2] : memref<36x648xf32, #tpu.memory_space<vmem>>, vector<4x648xf32>
    tpu.vector_store %arg14[%c0_1, %c0_2], %0 {strides = array<i32>} : memref<36x648xf32, #tpu.memory_space<vmem>>, vector<4x648xf32>,
    %c0_3 = arith.constant 0 : index
    %c1 = arith.constant 1 : index
    %2 = vector.load %arg1[%c0_3, %c1] : memref<4x768xf32, #tpu.memory_space<vmem>>, vector<4x648xf32>
    %c4 = arith.constant 4 : index
    %c0_4 = arith.constant 0 : index
    %3 = vector.load %arg14[%c4, %c0_4] : memref<36x648xf32, #tpu.memory_space<vmem>>, vector<4x648xf32>
    tpu.vector_store %arg14[%c4, %c0_4], %2 {strides = array<i32>} : memref<36x648xf32, #tpu.memory_space<vmem>>, vector<4x648xf32>,
    %c0_5 = arith.constant 0 : index
    %c2 = arith.constant 2 : index
    %4 = vector.load %arg1[%c0_5, %c2] : memref<4x768xf32, #tpu.memory_space<vmem>>, vector<4x648xf32>
    %c8 = arith.constant 8 : index
    %c0_6 = arith.constant 0 : index
    %5 = vector.load %arg14[%c8, %c0_6] : memref<36x648xf32, #tpu.memory_space<vmem>>, vector<4x648xf32>
    tpu.vector_store %arg14[%c8, %c0_6], %4 {strides = array<i32>} : memref<36x648xf32, #tpu.memory_space<vmem>>, vector<4x648xf32>,
    %c0_7 = arith.constant 0 : index
    %c18 = arith.constant 18 : index
    %6 = vector.load %arg1[%c0_7, %c18] : memref<4x768xf32, #tpu.memory_space<vmem>>, vector<4x648xf32>
    %c12 = arith.constant 12 : index
    %c0_8 = arith.constant 0 : index
    %7 = vector.load %arg14[%c12, %c0_8] : memref<36x648xf32, #tpu.memory_space<vmem>>, vector<4x648xf32>
    tpu.vector_store %arg14[%c12, %c0_8], %6 {strides = array<i32>} : memref<36x648xf32, #tpu.memory_space<vmem>>, vector<4x648xf32>,
    %c0_9 = arith.constant 0 : index
    %c19 = arith.constant 19 : index
    %8 = vector.load %arg1[%c0_9, %c19] : memref<4x768xf32, #tpu.memory_space<vmem>>, vector<4x648xf32>
    %c16 = arith.constant 16 : index
    %c0_10 = arith.constant 0 : index
    %9 = vector.load %arg14[%c16, %c0_10] : memref<36x648xf32, #tpu.memory_space<vmem>>, vector<4x648xf32>
    tpu.vector_store %arg14[%c16, %c0_10], %8 {strides = array<i32>} : memref<36x648xf32, #tpu.memory_space<vmem>>, vector<4x648xf32>,
    %c0_11 = arith.constant 0 : index
    %c20 = arith.constant 20 : index
    %10 = vector.load %arg1[%c0_11, %c20] : memref<4x768xf32, #tpu.memory_space<vmem>>, vector<4x648xf32>
    %c20_12 = arith.constant 20 : index
    %c0_13 = arith.constant 0 : index
    %11 = vector.load %arg14[%c20_12, %c0_13] : memref<36x648xf32, #tpu.memory_space<vmem>>, vector<4x648xf32>
    tpu.vector_store %arg14[%c20_12, %c0_13], %10 {strides = array<i32>} : memref<36x648xf32, #tpu.memory_space<vmem>>, vector<4x648xf32>,
    %c0_14 = arith.constant 0 : index
    %c36 = arith.constant 36 : index
    %12 = vector.load %arg1[%c0_14, %c36] : memref<4x768xf32, #tpu.memory_space<vmem>>, vector<4x648xf32>
    %c24 = arith.constant 24 : index
    %c0_15 = arith.constant 0 : index
    %13 = vector.load %arg14[%c24, %c0_15] : memref<36x648xf32, #tpu.memory_space<vmem>>, vector<4x648xf32>
    tpu.vector_store %arg14[%c24, %c0_15], %12 {strides = array<i32>} : memref<36x648xf32, #tpu.memory_space<vmem>>, vector<4x648xf32>,
    %c0_16 = arith.constant 0 : index
    %c37 = arith.constant 37 : index
    %14 = vector.load %arg1[%c0_16, %c37] : memref<4x768xf32, #tpu.memory_space<vmem>>, vector<4x648xf32>
    %c28 = arith.constant 28 : index
    %c0_17 = arith.constant 0 : index
    %15 = vector.load %arg14[%c28, %c0_17] : memref<36x648xf32, #tpu.memory_space<vmem>>, vector<4x648xf32>
    tpu.vector_store %arg14[%c28, %c0_17], %14 {strides = array<i32>} : memref<36x648xf32, #tpu.memory_space<vmem>>, vector<4x648xf32>,
    %c0_18 = arith.constant 0 : index
    %c38 = arith.constant 38 : index
    %16 = vector.load %arg1[%c0_18, %c38] : memref<4x768xf32, #tpu.memory_space<vmem>>, vector<4x648xf32>
    %c32 = arith.constant 32 : index
    %c0_19 = arith.constant 0 : index
    %17 = vector.load %arg14[%c32, %c0_19] : memref<36x648xf32, #tpu.memory_space<vmem>>, vector<4x648xf32>
    tpu.vector_store %arg14[%c32, %c0_19], %16 {strides = array<i32>} : memref<36x648xf32, #tpu.memory_space<vmem>>, vector<4x648xf32>,
    %c0_20 = arith.constant 0 : index
    %c0_21 = arith.constant 0 : index
    %18 = vector.load %arg3[%c0_20, %c0_21] : memref<8x36xf32, #tpu.memory_space<vmem>>, vector<8x36xf32>
    %c0_22 = arith.constant 0 : index
    %c0_23 = arith.constant 0 : index
    %19 = vector.load %arg14[%c0_22, %c0_23] : memref<36x648xf32, #tpu.memory_space<vmem>>, vector<36x648xf32>
    %cst = arith.constant dense<0.000000e+00> : vector<8x648xf32>
    %20 = tpu.matmul %18, %19, %cst {dimension_numbers = #tpu.dot_dimension_numbers<[1], [0], [0], [1], [0, 0, 1, 1], [], []>} : vector<8x36xf32>, vector<36x648xf32>, vector<8x648xf32> -> vector<8x648xf32>
    %c0_24 = arith.constant 0 : index
    %c0_25 = arith.constant 0 : index
    %21 = vector.load %arg4[%c0_24, %c0_25] : memref<8x1xf32, #tpu.memory_space<vmem>>, vector<8x1xf32>
    %22 = vector.broadcast %21 : vector<8x1xf32> to vector<8x648xf32>
    %23 = arith.mulf %20, %22 : vector<8x648xf32>
    %c0_26 = arith.constant 0 : index
    %c0_27 = arith.constant 0 : index
    %24 = vector.load %arg5[%c0_26, %c0_27] : memref<8x1xf32, #tpu.memory_space<vmem>>, vector<8x1xf32>
    %25 = vector.broadcast %24 : vector<8x1xf32> to vector<8x648xf32>
    %26 = arith.addf %23, %25 : vector<8x648xf32>
    %cst_28 = arith.constant 0.000000e+00 : f32
    %27 = vector.broadcast %cst_28 : f32 to vector<8x648xf32>
    %28 = arith.maximumf %26, %27 : vector<8x648xf32>
    %c0_29 = arith.constant 0 : index
    %c0_30 = arith.constant 0 : index
    %29 = vector.load %arg2[%c0_29, %c0_30] : memref<1x648xf32, #tpu.memory_space<vmem>>, vector<1x648xf32>
    %30 = vector.broadcast %29 : vector<1x648xf32> to vector<8x648xf32>
    %31 = arith.mulf %28, %30 : vector<8x648xf32>
    %cst_31 = arith.constant 0.000000e+00 : f32
    %32 = vector.broadcast %cst_31 : f32 to vector<8x768xf32>
    %c0_32 = arith.constant 0 : index
    %c0_33 = arith.constant 0 : index
    %33 = vector.load %arg15[%c0_32, %c0_33] : memref<8x768xf32, #tpu.memory_space<vmem>>, vector<8x768xf32>
    tpu.vector_store %arg15[%c0_32, %c0_33], %32 {strides = array<i32>} : memref<8x768xf32, #tpu.memory_space<vmem>>, vector<8x768xf32>,
    %c0_34 = arith.constant 0 : index
    %c19_35 = arith.constant 19 : index
    %34 = vector.load %arg15[%c0_34, %c19_35] : memref<8x768xf32, #tpu.memory_space<vmem>>, vector<8x648xf32>
    tpu.vector_store %arg15[%c0_34, %c19_35], %31 {strides = array<i32>} : memref<8x768xf32, #tpu.memory_space<vmem>>, vector<8x648xf32>,
    %c0_36 = arith.constant 0 : index
    %c0_37 = arith.constant 0 : index
    %35 = vector.load %arg15[%c0_36, %c0_37] : memref<8x768xf32, #tpu.memory_space<vmem>>, vector<8x648xf32>
    %c0_38 = arith.constant 0 : index
    %c0_39 = arith.constant 0 : index
    %36 = vector.load %arg16[%c0_38, %c0_39] : memref<72x648xf32, #tpu.memory_space<vmem>>, vector<8x648xf32>
    tpu.vector_store %arg16[%c0_38, %c0_39], %35 {strides = array<i32>} : memref<72x648xf32, #tpu.memory_space<vmem>>, vector<8x648xf32>,
    %c0_40 = arith.constant 0 : index
    %c1_41 = arith.constant 1 : index
    %37 = vector.load %arg15[%c0_40, %c1_41] : memref<8x768xf32, #tpu.memory_space<vmem>>, vector<8x648xf32>
    %c8_42 = arith.constant 8 : index
    %c0_43 = arith.constant 0 : index
    %38 = vector.load %arg16[%c8_42, %c0_43] : memref<72x648xf32, #tpu.memory_space<vmem>>, vector<8x648xf32>
    tpu.vector_store %arg16[%c8_42, %c0_43], %37 {strides = array<i32>} : memref<72x648xf32, #tpu.memory_space<vmem>>, vector<8x648xf32>,
    %c0_44 = arith.constant 0 : index
    %c2_45 = arith.constant 2 : index
    %39 = vector.load %arg15[%c0_44, %c2_45] : memref<8x768xf32, #tpu.memory_space<vmem>>, vector<8x648xf32>
    %c16_46 = arith.constant 16 : index
    %c0_47 = arith.constant 0 : index
    %40 = vector.load %arg16[%c16_46, %c0_47] : memref<72x648xf32, #tpu.memory_space<vmem>>, vector<8x648xf32>
    tpu.vector_store %arg16[%c16_46, %c0_47], %39 {strides = array<i32>} : memref<72x648xf32, #tpu.memory_space<vmem>>, vector<8x648xf32>,
    %c0_48 = arith.constant 0 : index
    %c18_49 = arith.constant 18 : index
    %41 = vector.load %arg15[%c0_48, %c18_49] : memref<8x768xf32, #tpu.memory_space<vmem>>, vector<8x648xf32>
    %c24_50 = arith.constant 24 : index
    %c0_51 = arith.constant 0 : index
    %42 = vector.load %arg16[%c24_50, %c0_51] : memref<72x648xf32, #tpu.memory_space<vmem>>, vector<8x648xf32>
    tpu.vector_store %arg16[%c24_50, %c0_51], %41 {strides = array<i32>} : memref<72x648xf32, #tpu.memory_space<vmem>>, vector<8x648xf32>,
    %c0_52 = arith.constant 0 : index
    %c19_53 = arith.constant 19 : index
    %43 = vector.load %arg15[%c0_52, %c19_53] : memref<8x768xf32, #tpu.memory_space<vmem>>, vector<8x648xf32>
    %c32_54 = arith.constant 32 : index
    %c0_55 = arith.constant 0 : index
    %44 = vector.load %arg16[%c32_54, %c0_55] : memref<72x648xf32, #tpu.memory_space<vmem>>, vector<8x648xf32>
    tpu.vector_store %arg16[%c32_54, %c0_55], %43 {strides = array<i32>} : memref<72x648xf32, #tpu.memory_space<vmem>>, vector<8x648xf32>,
    %c0_56 = arith.constant 0 : index
    %c20_57 = arith.constant 20 : index
    %45 = vector.load %arg15[%c0_56, %c20_57] : memref<8x768xf32, #tpu.memory_space<vmem>>, vector<8x648xf32>
    %c40 = arith.constant 40 : index
    %c0_58 = arith.constant 0 : index
    %46 = vector.load %arg16[%c40, %c0_58] : memref<72x648xf32, #tpu.memory_space<vmem>>, vector<8x648xf32>
    tpu.vector_store %arg16[%c40, %c0_58], %45 {strides = array<i32>} : memref<72x648xf32, #tpu.memory_space<vmem>>, vector<8x648xf32>,
    %c0_59 = arith.constant 0 : index
    %c36_60 = arith.constant 36 : index
    %47 = vector.load %arg15[%c0_59, %c36_60] : memref<8x768xf32, #tpu.memory_space<vmem>>, vector<8x648xf32>
    %c48 = arith.constant 48 : index
    %c0_61 = arith.constant 0 : index
    %48 = vector.load %arg16[%c48, %c0_61] : memref<72x648xf32, #tpu.memory_space<vmem>>, vector<8x648xf32>
    tpu.vector_store %arg16[%c48, %c0_61], %47 {strides = array<i32>} : memref<72x648xf32, #tpu.memory_space<vmem>>, vector<8x648xf32>,
    %c0_62 = arith.constant 0 : index
    %c37_63 = arith.constant 37 : index
    %49 = vector.load %arg15[%c0_62, %c37_63] : memref<8x768xf32, #tpu.memory_space<vmem>>, vector<8x648xf32>
    %c56 = arith.constant 56 : index
    %c0_64 = arith.constant 0 : index
    %50 = vector.load %arg16[%c56, %c0_64] : memref<72x648xf32, #tpu.memory_space<vmem>>, vector<8x648xf32>
    tpu.vector_store %arg16[%c56, %c0_64], %49 {strides = array<i32>} : memref<72x648xf32, #tpu.memory_space<vmem>>, vector<8x648xf32>,
    %c0_65 = arith.constant 0 : index
    %c38_66 = arith.constant 38 : index
    %51 = vector.load %arg15[%c0_65, %c38_66] : memref<8x768xf32, #tpu.memory_space<vmem>>, vector<8x648xf32>
    %c64 = arith.constant 64 : index
    %c0_67 = arith.constant 0 : index
    %52 = vector.load %arg16[%c64, %c0_67] : memref<72x648xf32, #tpu.memory_space<vmem>>, vector<8x648xf32>
    tpu.vector_store %arg16[%c64, %c0_67], %51 {strides = array<i32>} : memref<72x648xf32, #tpu.memory_space<vmem>>, vector<8x648xf32>,
    %c0_68 = arith.constant 0 : index
    %c0_69 = arith.constant 0 : index
    %53 = vector.load %arg6[%c0_68, %c0_69] : memref<16x72xf32, #tpu.memory_space<vmem>>, vector<16x72xf32>
    %c0_70 = arith.constant 0 : index
    %c0_71 = arith.constant 0 : index
    %54 = vector.load %arg16[%c0_70, %c0_71] : memref<72x648xf32, #tpu.memory_space<vmem>>, vector<72x648xf32>
    %cst_72 = arith.constant dense<0.000000e+00> : vector<16x648xf32>
    %55 = tpu.matmul %53, %54, %cst_72 {dimension_numbers = #tpu.dot_dimension_numbers<[1], [0], [0], [1], [0, 0, 1, 1], [], []>} : vector<16x72xf32>, vector<72x648xf32>, vector<16x648xf32> -> vector<16x648xf32>
    %c0_73 = arith.constant 0 : index
    %c0_74 = arith.constant 0 : index
    %56 = vector.load %arg9[%c0_73, %c0_74] : memref<648x128xf32, #tpu.memory_space<vmem>>, vector<648x128xf32>
    %cst_75 = arith.constant dense<0.000000e+00> : vector<16x128xf32>
    %57 = tpu.matmul %55, %56, %cst_75 {dimension_numbers = #tpu.dot_dimension_numbers<[1], [0], [0], [1], [0, 0, 1, 1], [], []>} : vector<16x648xf32>, vector<648x128xf32>, vector<16x128xf32> -> vector<16x128xf32>
    %c0_76 = arith.constant 0 : index
    %c0_77 = arith.constant 0 : index
    %58 = vector.load %arg7[%c0_76, %c0_77] : memref<16x1xf32, #tpu.memory_space<vmem>>, vector<16x1xf32>
    %59 = vector.broadcast %58 : vector<16x1xf32> to vector<16x128xf32>
    %60 = arith.mulf %57, %59 : vector<16x128xf32>
    %c0_78 = arith.constant 0 : index
    %c0_79 = arith.constant 0 : index
    %61 = vector.load %arg8[%c0_78, %c0_79] : memref<16x1xf32, #tpu.memory_space<vmem>>, vector<16x1xf32>
    %62 = vector.broadcast %61 : vector<16x1xf32> to vector<16x128xf32>
    %63 = arith.addf %60, %62 : vector<16x128xf32>
    %cst_80 = arith.constant 0.000000e+00 : f32
    %64 = vector.broadcast %cst_80 : f32 to vector<16x128xf32>
    %65 = arith.maximumf %63, %64 : vector<16x128xf32>
    %c0_81 = arith.constant 0 : index
    %c0_82 = arith.constant 0 : index
    %66 = vector.load %arg10[%c0_81, %c0_82] : memref<128x2xf32, #tpu.memory_space<vmem>>, vector<128x2xf32>
    %cst_83 = arith.constant dense<0.000000e+00> : vector<16x2xf32>
    %67 = tpu.matmul %65, %66, %cst_83 {dimension_numbers = #tpu.dot_dimension_numbers<[1], [0], [0], [1], [0, 0, 1, 1], [], []>} : vector<16x128xf32>, vector<128x2xf32>, vector<16x2xf32> -> vector<16x2xf32>
    %c0_84 = arith.constant 0 : index
    %c0_85 = arith.constant 0 : index
    %68 = vector.load %arg11[%c0_84, %c0_85] : memref<10x16xf32, #tpu.memory_space<vmem>>, vector<10x16xf32>
    %cst_86 = arith.constant dense<0.000000e+00> : vector<10x2xf32>
    %69 = tpu.matmul %68, %67, %cst_86 {dimension_numbers = #tpu.dot_dimension_numbers<[1], [0], [0], [1], [0, 0, 1, 1], [], []>} : vector<10x16xf32>, vector<16x2xf32>, vector<10x2xf32> -> vector<10x2xf32>
    %c0_87 = arith.constant 0 : index
    %c0_88 = arith.constant 0 : index
    %70 = vector.load %arg12[%c0_87, %c0_88] : memref<10x1xf32, #tpu.memory_space<vmem>>, vector<10x1xf32>
    %71 = vector.broadcast %70 : vector<10x1xf32> to vector<10x2xf32>
    %72 = arith.addf %69, %71 : vector<10x2xf32>
    %c0_89 = arith.constant 0 : index
    %c0_90 = arith.constant 0 : index
    %73 = vector.load %arg13[%c0_89, %c0_90] : memref<10x2xf32, #tpu.memory_space<vmem>>, vector<10x2xf32>
    tpu.vector_store %arg13[%c0_89, %c0_90], %72 {strides = array<i32>} : memref<10x2xf32, #tpu.memory_space<vmem>>, vector<10x2xf32>,
    return
  }
  func.func @transform_0(%arg0: i32) -> (i32, i32) {
    %c0_i32 = arith.constant 0 : i32
    %c0_i32_0 = arith.constant 0 : i32
    %c0_i32_1 = arith.constant 0 : i32
    return %c0_i32, %c0_i32_0 : i32, i32
  }
  func.func @transform_1(%arg0: i32) -> (i32, i32) {
    %c0_i32 = arith.constant 0 : i32
    %c0_i32_0 = arith.constant 0 : i32
    %c0_i32_1 = arith.constant 0 : i32
    return %c0_i32, %c0_i32_0 : i32, i32
  }
  func.func @transform_2(%arg0: i32) -> (i32, i32) {
    %c0_i32 = arith.constant 0 : i32
    %c0_i32_0 = arith.constant 0 : i32
    %c0_i32_1 = arith.constant 0 : i32
    return %c0_i32, %c0_i32_0 : i32, i32
  }
  func.func @transform_3(%arg0: i32) -> (i32, i32) {
    %c0_i32 = arith.constant 0 : i32
    %c0_i32_0 = arith.constant 0 : i32
    %c0_i32_1 = arith.constant 0 : i32
    return %c0_i32, %c0_i32_0 : i32, i32
  }
  func.func @transform_4(%arg0: i32) -> (i32, i32) {
    %c0_i32 = arith.constant 0 : i32
    %c0_i32_0 = arith.constant 0 : i32
    %c0_i32_1 = arith.constant 0 : i32
    return %c0_i32, %c0_i32_0 : i32, i32
  }
  func.func @transform_5(%arg0: i32) -> (i32, i32) {
    %c0_i32 = arith.constant 0 : i32
    %c0_i32_0 = arith.constant 0 : i32
    %c0_i32_1 = arith.constant 0 : i32
    return %c0_i32, %c0_i32_0 : i32, i32
  }
  func.func @transform_6(%arg0: i32) -> (i32, i32) {
    %c0_i32 = arith.constant 0 : i32
    %c0_i32_0 = arith.constant 0 : i32
    %c0_i32_1 = arith.constant 0 : i32
    return %c0_i32, %c0_i32_0 : i32, i32
  }
  func.func @transform_7(%arg0: i32) -> (i32, i32) {
    %c0_i32 = arith.constant 0 : i32
    %c0_i32_0 = arith.constant 0 : i32
    %c0_i32_1 = arith.constant 0 : i32
    return %c0_i32, %c0_i32_0 : i32, i32
  }
  func.func @transform_8(%arg0: i32) -> (i32, i32) {
    %c0_i32 = arith.constant 0 : i32
    %c0_i32_0 = arith.constant 0 : i32
    %c0_i32_1 = arith.constant 0 : i32
    return %c0_i32, %c0_i32_0 : i32, i32
  }
  func.func @transform_9(%arg0: i32) -> (i32, i32) {
    %c0_i32 = arith.constant 0 : i32
    %c0_i32_0 = arith.constant 0 : i32
    %c0_i32_1 = arith.constant 0 : i32
    return %c0_i32, %c0_i32_0 : i32, i32
  }
  func.func @transform_10(%arg0: i32) -> (i32, i32) {
    %c0_i32 = arith.constant 0 : i32
    %c0_i32_0 = arith.constant 0 : i32
    %c0_i32_1 = arith.constant 0 : i32
    return %c0_i32, %c0_i32_0 : i32, i32
  }
  func.func @transform_11(%arg0: i32) -> (i32, i32) {
    %c0_i32 = arith.constant 0 : i32
    %c0_i32_0 = arith.constant 0 : i32
    %c0_i32_1 = arith.constant 0 : i32
    return %c0_i32, %c0_i32_0 : i32, i32
  }
  func.func @transform_12(%arg0: i32) -> (i32, i32) {
    %c0_i32 = arith.constant 0 : i32
    %c0_i32_0 = arith.constant 0 : i32
    %c0_i32_1 = arith.constant 0 : i32
    return %c0_i32, %c0_i32_0 : i32, i32
  }
}

</mosaic_0001>

<bundles_post_ra>
// kernel: forward.1
= control target key start
LH: loop header
LB: loop body
LE: loop exit
PB: predicated region body
PF: predicated region fallthrough
CT: control target
= control target key end

     0   :  { %s2299_s27 = smov 126   ;;  %s2300_s28 = smov 127   ;;  %vm58_vm0 = vcmask 60416   ;;  %v2307_v9 = vmov 0.0   ;;  %v2308_v10 = vmov 0   ;;  %vm121_vm1 = vcmask 1031168   ;;  %s3102_s0 = inlined_call_operand.vmem [shape: f32[4,768], index: 0, kind: input, shape index: {}]   ;;  %s3103_s3 = inlined_call_operand.vmem [shape: f32[8,1], index: 3, kind: input, shape index: {}]   ;;  %s3104_s4 = inlined_call_operand.vmem [shape: f32[8,1], index: 4, kind: input, shape index: {}]   ;;  %s3105_s2 = inlined_call_operand.vmem [shape: f32[8,36], index: 2, kind: input, shape index: {}]   ;;  %s3106_s1 = inlined_call_operand.vmem [shape: f32[1,648], index: 1, kind: input, shape index: {}]   ;;  %s3107_s6 = inlined_call_operand.vmem [shape: f32[16,1], index: 6, kind: input, shape index: {}]   ;;  %s3108_s7 = inlined_call_operand.vmem [shape: f32[16,1], index: 7, kind: input, shape index: {}]   ;;  %s3109_s11 = inlined_call_operand.vmem [shape: f32[10,1], index: 11, kind: input, shape index: {}]   ;;  %s3110_s5 = inlined_call_operand.vmem [shape: f32[16,72], index: 5, kind: input, shape index: {}]   ;;  %s3111_s8 = inlined_call_operand.vmem [shape: f32[648,128], index: 8, kind: input, shape index: {}]   ;;  %s3112_s9 = inlined_call_operand.vmem [shape: f32[128,2], index: 9, kind: input, shape index: {}]   ;;  %s3113_s10 = inlined_call_operand.vmem [shape: f32[10,16], index: 10, kind: input, shape index: {}]   ;;  %s3114_s12 = inlined_call_operand.vmem [shape: f32[10,2], index: 12, kind: output, shape index: {}]  }
   0x1   :  { %v2379_v0 = vld [vmem:[%s3102_s0 + $0x8] sm:$0xff]  ;;  %v2384_v1 = vld [vmem:[%s3102_s0] sm:$0xff]  ;;  %v2389_v2 = vld [vmem:[%s3102_s0 + $0x10] sm:$0xff]  ;;  %s2301_s0 = smov 110   ;;  %s2302_s29 = smov 109   ;;  %491 = vmatprep.mubr.f32.mxu0 %v2307_v9  ;;  %708 = vst [vmem:[#allocation3] sm:$0xff] %v2307_v9  ;;  %562 = vmatprep.mubr.f32.mxu1 %v2307_v9 }
   0x2   :  { %113 = vrot.lane.b32.xlu1 %v2379_v0, %s2299_s27  ;;  %v107_v3 = vcombine.high %v2379_v0, %v2379_v0  ;;  %71 = vrot.lane.b32.xlu0 %v2384_v1, %s2300_s28  ;;  %v106_v4 = vcombine.high %v2384_v1, %v2384_v1  ;;  %53 = vst [vmem:[#allocation2] sm:$0xf] %v2384_v1  ;;  %55 = vst [vmem:[#allocation2 + $0x10] sm:$0xf] %v2379_v0  ;;  %s2303_s30 = smov 108   ;;  %s2304_s13 = smov 92  }
   0x3   :  { %57 = vst [vmem:[#allocation2 + $0x20] sm:$0xf] %v2389_v2  ;;  %v67_v5 = vcombine.low %v2379_v0, %v2379_v0  ;;  %v66_v6 = vcombine.low %v2384_v1, %v2384_v1  ;;  %v68_v7 = vcombine.low %v2389_v2, %v2389_v2  ;;  %s2305_s14 = smov 91   ;;  %v108_v8 = vcombine.high %v2389_v2, %v2389_v2  ;;  %s2306_s15 = smov 90   ;;  %v640_v11 = vld [vmem:[%s3103_s3] sm:$0xff] }
   0x4   :  { %54 = vst [vmem:[#allocation2 + $0x8] sm:$0xf] %v106_v4  ;;  %56 = vst [vmem:[#allocation2 + $0x18] sm:$0xf] %v107_v3  ;;  %2291 = vset.pattern.permute.xlu0 %v2308_v10  ;;  %2292 = vset.pattern.permute.xlu1 %v2308_v10  ;;  %v652_v12 = vld [vmem:[%s3104_s4] sm:$0xff]  ;;  %vm81_vm2 = vcmask 1039360  }
   0x5   :  { %59 = vst.msk [vmem:[#allocation2 + $0x28] sm:$0xf] %vm58_vm0, %v108_v8  ;;  %713 = vst [vmem:[#allocation3 + $0x28] sm:$0xff] %v2307_v9  ;;  %vm160_vm3 = vcmask 900096   ;;  %vm199_vm4 = vcmask 891904   ;;  %vm238_vm5 = vcmask 883712  }
   0x6   :  { %111 = vrot.lane.b32.xlu1 %v106_v4, %s2299_s27  ;;  %73 = vrot.lane.b32.xlu0 %v67_v5, %s2300_s28  ;;  %vm277_vm6 = vcmask 752640   ;;  %vm316_vm7 = vcmask 744448   ;;  %vm355_vm8 = vcmask 736256   ;;  %vm98_vm9 = vcmask 64516  }
   0x7   :  { %vm408_vm10 = vcmask 1043456   ;;  %vm404_vm11 = vcmask 293888   ;;  %vm744_vm12 = vcmask 1047704   ;;  %vm732_vm13 = vcmask 154624  }
   0x8   :  { %vm750_vm14 = vcmask 220160   ;;  %vm763_vm15 = vcmask 64512  }
   0xa   :  { %152 = vrot.lane.b32.xlu1 %v67_v5, %s2301_s0  ;;  %150 = vrot.lane.b32.xlu0 %v2384_v1, %s2301_s0 }
   0xe   :  { %75 = vrot.lane.b32.xlu1 %v2379_v0, %s2300_s28  ;;  %69 = vrot.lane.b32.xlu0 %v66_v6, %s2300_s28 }
  0x12   :  { %109 = vrot.lane.b32.xlu1 %v2384_v1, %s2299_s27  ;;  %77 = vrot.lane.b32.xlu0 %v68_v7, %s2300_s28 }
  0x16   :  { %117 = vrot.lane.b32.xlu1 %v2389_v2, %s2299_s27  ;;  %115 = vrot.lane.b32.xlu0 %v107_v3, %s2299_s27 }
  0x1a   :  { %154 = vrot.lane.b32.xlu1 %v2379_v0, %s2301_s0  ;;  %148 = vrot.lane.b32.xlu0 %v66_v6, %s2301_s0 }
  0x1e   :  { %189 = vrot.lane.b32.xlu1 %v106_v4, %s2302_s29  ;;  %156 = vrot.lane.b32.xlu0 %v68_v7, %s2301_s0 }
  0x22   :  { %228 = vrot.lane.b32.xlu1 %v2384_v1, %s2303_s30  ;;  %191 = vrot.lane.b32.xlu0 %v2379_v0, %s2302_s29 }
  0x26   :  { %267 = vrot.lane.b32.xlu1 %v106_v4, %s2304_s13  ;;  %230 = vrot.lane.b32.xlu0 %v67_v5, %s2303_s30 }
  0x2a   :  { %306 = vrot.lane.b32.xlu1 %v2384_v1, %s2305_s14  ;;  %269 = vrot.lane.b32.xlu0 %v2379_v0, %s2304_s13 }
  0x2e   :  { %187 = vrot.lane.b32.xlu1 %v2384_v1, %s2302_s29  ;;  %308 = vrot.lane.b32.xlu0 %v67_v5, %s2305_s14 }
  0x32   :  { %195 = vrot.lane.b32.xlu1 %v2389_v2, %s2302_s29  ;;  %193 = vrot.lane.b32.xlu0 %v107_v3, %s2302_s29 }
  0x36   :  { %232 = vrot.lane.b32.xlu1 %v2379_v0, %s2303_s30  ;;  %226 = vrot.lane.b32.xlu0 %v66_v6, %s2303_s30 }
  0x3a   :  { %265 = vrot.lane.b32.xlu1 %v2384_v1, %s2304_s13  ;;  %234 = vrot.lane.b32.xlu0 %v68_v7, %s2303_s30 }
  0x3e   :  { %273 = vrot.lane.b32.xlu1 %v2389_v2, %s2304_s13  ;;  %271 = vrot.lane.b32.xlu0 %v107_v3, %s2304_s13 }
  0x42   :  { %310 = vrot.lane.b32.xlu1 %v2379_v0, %s2305_s14  ;;  %304 = vrot.lane.b32.xlu0 %v66_v6, %s2305_s14 }
  0x46   :  { %345 = vrot.lane.b32.xlu1 %v106_v4, %s2306_s15  ;;  %312 = vrot.lane.b32.xlu0 %v68_v7, %s2305_s14 }
  0x4a   :  { %343 = vrot.lane.b32.xlu1 %v2384_v1, %s2306_s15  ;;  %347 = vrot.lane.b32.xlu0 %v2379_v0, %s2306_s15 }
  0x4e   :  { %351 = vrot.lane.b32.xlu1 %v2389_v2, %s2306_s15  ;;  %349 = vrot.lane.b32.xlu0 %v107_v3, %s2306_s15 }
  0x52   :  { %119 = vrot.lane.b32.xlu1 %v108_v8, %s2299_s27  ;;  %79 = vrot.lane.b32.xlu0 %v2389_v2, %s2300_s28 }
  0x56   :  { %197 = vrot.lane.b32.xlu1 %v108_v8, %s2302_s29  ;;  %158 = vrot.lane.b32.xlu0 %v2389_v2, %s2301_s0 }
  0x5a   :  { %275 = vrot.lane.b32.xlu1 %v108_v8, %s2304_s13  ;;  %236 = vrot.lane.b32.xlu0 %v2389_v2, %s2303_s30 }
  0x5e   :  { %353 = vrot.lane.b32.xlu1 %v108_v8, %s2306_s15  ;;  %314 = vrot.lane.b32.xlu0 %v2389_v2, %s2305_s14 }
  0x62   :  { %643 = vperm.xlu0 %2291, %v640_v11   ;;  %655 = vperm.xlu1 %2292, %v652_v12  }
  0x74   :  { %v114_v13 = vpop.permute.xlu1 %113  ;;  %v72_v14 = vpop.permute.xlu0 %71 }
  0x78   :  { %v112_v15 = vpop.permute.xlu1 %111  ;;  %v74_v16 = vpop.permute.xlu0 %73 }
  0x79   :  { %v123_v17 = vsel %vm121_vm1, %v112_v15, %v114_v13  ;;  %v83_v18 = vsel %vm81_vm2, %v72_v14, %v74_v16 }
  0x7a   :  { %134 = vst [vmem:[#allocation2 + $0x38] sm:$0xf] %v123_v17  ;;  %94 = vst [vmem:[#allocation2 + $0x8] sm:$0xf0] %v83_v18 }
  0x7c   :  { %v153_v19 = vpop.permute.xlu1 %152  ;;  %v151_v20 = vpop.permute.xlu0 %150 }
  0x7d   :  { %v162_v21 = vsel %vm160_vm3, %v151_v20, %v153_v19 }
  0x7e   :  { %173 = vst [vmem:[#allocation2 + $0x38] sm:$0xf0] %v162_v21 }
  0x80   :  { %v76_v22 = vpop.permute.xlu1 %75  ;;  %v70_v23 = vpop.permute.xlu0 %69 }
  0x81   :  { %v84_v24 = vsel %vm81_vm2, %v74_v16, %v76_v22  ;;  %v82_v25 = vsel %vm81_vm2, %v70_v23, %v72_v14  ;;  %v375_v30 = vld [vmem:[#allocation2 + $0x8] sm:$0xff] }
  0x82   :  { %95 = vst [vmem:[#allocation2 + $0x10] sm:$0xf0] %v84_v24  ;;  %93 = vst [vmem:[#allocation2] sm:$0xf0] %v82_v25 }
  0x84   :  { %v110_v26 = vpop.permute.xlu1 %109  ;;  %v2494_v27 = vpop.permute.xlu0 %77 }
  0x85   :  { %v122_v28 = vsel %vm121_vm1, %v110_v26, %v112_v15  ;;  %v85_v29 = vsel %vm81_vm2, %v76_v22, %v2494_v27  ;;  %v381_v31 = vld [vmem:[#allocation2 + $0x38] sm:$0xff] }
  0x86   :  { %133 = vst [vmem:[#allocation2 + $0x30] sm:$0xf] %v122_v28  ;;  %96 = vst [vmem:[#allocation2 + $0x18] sm:$0xf0] %v85_v29  ;;  %v2083_v32 = vpack.c.bf16 %v381_v31, %v375_v30 }
  0x88   :  { %v2499_v33 = vpop.permute.xlu1 %117  ;;  %v116_v34 = vpop.permute.xlu0 %115  ;;  %2084 = vmatprep.subr.bf16.mxu0 %v2083_v32 }
  0x89   :  { %v124_v35 = vsel %vm121_vm1, %v114_v13, %v116_v34  ;;  %v125_v36 = vsel %vm121_vm1, %v116_v34, %v2499_v33  ;;  %v374_v47 = vld [vmem:[#allocation2] sm:$0xff]  ;;  %v376_v57 = vld [vmem:[#allocation2 + $0x10] sm:$0xff] }
  0x8a   :  { %135 = vst [vmem:[#allocation2 + $0x40] sm:$0xf] %v124_v35  ;;  %136 = vst [vmem:[#allocation2 + $0x48] sm:$0xf] %v125_v36 }
  0x8c   :  { %v155_v37 = vpop.permute.xlu1 %154  ;;  %v149_v38 = vpop.permute.xlu0 %148 }
  0x8d   :  { %v163_v39 = vsel %vm160_vm3, %v153_v19, %v155_v37  ;;  %v161_v40 = vsel %vm160_vm3, %v149_v38, %v151_v20  ;;  %v377_v54 = vld [vmem:[#allocation2 + $0x18] sm:$0xff] }
  0x8e   :  { %174 = vst [vmem:[#allocation2 + $0x40] sm:$0xf0] %v163_v39  ;;  %172 = vst [vmem:[#allocation2 + $0x30] sm:$0xf0] %v161_v40 }
  0x90   :  { %v190_v41 = vpop.permute.xlu1 %189  ;;  %v2506_v42 = vpop.permute.xlu0 %156 }
  0x91   :  { %v164_v43 = vsel %vm160_vm3, %v155_v37, %v2506_v42 }
  0x92   :  { %175 = vst [vmem:[#allocation2 + $0x48] sm:$0xf0] %v164_v43 }
  0x94   :  { %v229_v44 = vpop.permute.xlu1 %228  ;;  %v192_v45 = vpop.permute.xlu0 %191 }
  0x95   :  { %v201_v46 = vsel %vm199_vm4, %v190_v41, %v192_v45  ;;  %v380_v48 = vld [vmem:[#allocation2 + $0x30] sm:$0xff]  ;;  %v382_v52 = vld [vmem:[#allocation2 + $0x40] sm:$0xff] }
  0x96   :  { %212 = vst [vmem:[#allocation2 + $0x68] sm:$0xf] %v201_v46  ;;  %v2085_v49 = vpack.c.bf16 %v380_v48, %v374_v47  ;;  %v2093_v58 = vpack.c.bf16 %v382_v52, %v376_v57 }
  0x98   :  { %v268_v50 = vpop.permute.xlu1 %267  ;;  %v231_v51 = vpop.permute.xlu0 %230  ;;  %2086 = vmatpush1.bf16.msra.mxu0 %v2085_v49 }
  0x99   :  { %v240_v53 = vsel %vm238_vm5, %v229_v44, %v231_v51  ;;  %v383_v55 = vld [vmem:[#allocation2 + $0x48] sm:$0xff] }
  0x9a   :  { %251 = vst [vmem:[#allocation2 + $0x68] sm:$0xf0] %v240_v53  ;;  %v2091_v56 = vpack.c.bf16 %v383_v55, %v377_v54  ;;  %v373_v55 = vld [vmem:[%s3105_s2] sm:$0xff] }
  0x9c   :  { %v307_v59 = vpop.permute.xlu1 %306  ;;  %v270_v60 = vpop.permute.xlu0 %269  ;;  %2092 = vmatprep.subr.bf16.mxu1 %v2091_v56 }
  0x9d   :  { %v279_v61 = vsel %vm277_vm6, %v268_v50, %v270_v60  ;;  %2094 = vmatpush1.bf16.msra.mxu1 %v2093_v58 }
  0x9e   :  { %290 = vst [vmem:[#allocation2 + $0x98] sm:$0xf] %v279_v61 }
  0xa0   :  { %v188_v62 = vpop.permute.xlu1 %187  ;;  %v309_v63 = vpop.permute.xlu0 %308 }
  0xa1   :  { %v200_v0 = vsel %vm199_vm4, %v188_v62, %v190_v41  ;;  %v318_v1 = vsel %vm316_vm7, %v307_v59, %v309_v63  ;;  %v387_v11 = vld [vmem:[#allocation2 + $0x68] sm:$0xff] }
  0xa2   :  { %211 = vst [vmem:[#allocation2 + $0x60] sm:$0xf] %v200_v0  ;;  %329 = vst [vmem:[#allocation2 + $0x98] sm:$0xf0] %v318_v1 }
  0xa4   :  { %v2515_v2 = vpop.permute.xlu1 %195  ;;  %v194_v3 = vpop.permute.xlu0 %193 }
  0xa5   :  { %v202_v4 = vsel %vm199_vm4, %v192_v45, %v194_v3  ;;  %v203_v5 = vsel %vm199_vm4, %v194_v3, %v2515_v2 }
  0xa6   :  { %213 = vst [vmem:[#allocation2 + $0x70] sm:$0xf] %v202_v4  ;;  %214 = vst [vmem:[#allocation2 + $0x78] sm:$0xf] %v203_v5 }
  0xa8   :  { %v233_v6 = vpop.permute.xlu1 %232  ;;  %v227_v7 = vpop.permute.xlu0 %226 }
  0xa9   :  { %v241_v8 = vsel %vm238_vm5, %v231_v51, %v233_v6  ;;  %v239_v10 = vsel %vm238_vm5, %v227_v7, %v229_v44  ;;  %v393_v12 = vld [vmem:[#allocation2 + $0x98] sm:$0xff] }
  0xaa   :  { %252 = vst [vmem:[#allocation2 + $0x70] sm:$0xf0] %v241_v8  ;;  %250 = vst [vmem:[#allocation2 + $0x60] sm:$0xf0] %v239_v10  ;;  %v2087_v13 = vpack.c.bf16 %v393_v12, %v387_v11 }
  0xac   :  { %v266_v14 = vpop.permute.xlu1 %265  ;;  %v2522_v15 = vpop.permute.xlu0 %234  ;;  %2088 = vmatprep.subr.bf16.mxu0 %v2087_v13 }
  0xad   :  { %v278_v16 = vsel %vm277_vm6, %v266_v14, %v268_v50  ;;  %v242_v17 = vsel %vm238_vm5, %v233_v6, %v2522_v15 }
  0xae   :  { %289 = vst [vmem:[#allocation2 + $0x90] sm:$0xf] %v278_v16  ;;  %253 = vst [vmem:[#allocation2 + $0x78] sm:$0xf0] %v242_v17 }
  0xb0   :  { %v2527_v18 = vpop.permute.xlu1 %273  ;;  %v272_v19 = vpop.permute.xlu0 %271 }
  0xb1   :  { %v280_v20 = vsel %vm277_vm6, %v270_v60, %v272_v19  ;;  %v281_v21 = vsel %vm277_vm6, %v272_v19, %v2527_v18  ;;  %v386_v35 = vld [vmem:[#allocation2 + $0x60] sm:$0xff]  ;;  %v388_v47 = vld [vmem:[#allocation2 + $0x70] sm:$0xff] }
  0xb2   :  { %291 = vst [vmem:[#allocation2 + $0xa0] sm:$0xf] %v280_v20  ;;  %292 = vst [vmem:[#allocation2 + $0xa8] sm:$0xf] %v281_v21 }
  0xb4   :  { %v311_v22 = vpop.permute.xlu1 %310  ;;  %v305_v23 = vpop.permute.xlu0 %304 }
  0xb5   :  { %v319_v24 = vsel %vm316_vm7, %v309_v63, %v311_v22  ;;  %v317_v25 = vsel %vm316_vm7, %v305_v23, %v307_v59  ;;  %v389_v44 = vld [vmem:[#allocation2 + $0x78] sm:$0xff] }
  0xb6   :  { %330 = vst [vmem:[#allocation2 + $0xa0] sm:$0xf0] %v319_v24  ;;  %328 = vst [vmem:[#allocation2 + $0x90] sm:$0xf0] %v317_v25  ;;  %v670_v24 = vld [vmem:[%s3106_s1] sm:$0x3f] }
  0xb7   :  { %s2309_s1 = smov 19  }
  0xb8   :  { %v346_v26 = vpop.permute.xlu1 %345  ;;  %v2534_v28 = vpop.permute.xlu0 %312 }
  0xb9   :  { %v320_v29 = vsel %vm316_vm7, %v311_v22, %v2534_v28 }
  0xba   :  { %331 = vst [vmem:[#allocation2 + $0xa8] sm:$0xf0] %v320_v29 }
  0xbc   :  { %v344_v30 = vpop.permute.xlu1 %343  ;;  %v348_v31 = vpop.permute.xlu0 %347 }
  0xbd   :  { %v356_v32 = vsel %vm355_vm8, %v344_v30, %v346_v26  ;;  %v357_v34 = vsel %vm355_vm8, %v346_v26, %v348_v31  ;;  %v392_v36 = vld [vmem:[#allocation2 + $0x90] sm:$0xff]  ;;  %v394_v40 = vld [vmem:[#allocation2 + $0xa0] sm:$0xff] }
  0xbe   :  { %367 = vst [vmem:[#allocation2 + $0xc0] sm:$0xf] %v356_v32  ;;  %368 = vst [vmem:[#allocation2 + $0xc8] sm:$0xf] %v357_v34  ;;  %v2089_v37 = vpack.c.bf16 %v392_v36, %v386_v35  ;;  %v2097_v48 = vpack.c.bf16 %v394_v40, %v388_v47 }
  0xc0   :  { %v352_v38 = vpop.permute.xlu1 %351  ;;  %v350_v39 = vpop.permute.xlu0 %349  ;;  %2090 = vmatpush1.bf16.msra.mxu0 %v2089_v37 }
  0xc1   :  { %v358_v41 = vsel %vm355_vm8, %v348_v31, %v350_v39  ;;  %v359_v43 = vsel %vm355_vm8, %v350_v39, %v352_v38  ;;  %v395_v45 = vld [vmem:[#allocation2 + $0xa8] sm:$0xff] }
  0xc2   :  { %369 = vst [vmem:[#allocation2 + $0xd0] sm:$0xf] %v358_v41  ;;  %370 = vst [vmem:[#allocation2 + $0xd8] sm:$0xf] %v359_v43  ;;  %v2095_v46 = vpack.c.bf16 %v395_v45, %v389_v44 }
  0xc4   :  { %v120_v49 = vpop.permute.xlu1 %119  ;;  %v80_v50 = vpop.permute.xlu0 %79  ;;  %2096 = vmatprep.subr.bf16.mxu1 %v2095_v46 }
  0xc5   :  { %v126_v51 = vsel %vm121_vm1, %v2499_v33, %v120_v49  ;;  %138 = vst.msk [vmem:[#allocation2 + $0x58] sm:$0xf] %vm58_vm0, %v120_v49  ;;  %v86_v52 = vsel %vm81_vm2, %v2494_v27, %v80_v50  ;;  %2098 = vmatpush1.bf16.msra.mxu1 %v2097_v48  ;;  %v399_v53 = vld [vmem:[#allocation2 + $0xc8] sm:$0xf]  ;;  %v398_v54 = vld [vmem:[#allocation2 + $0xc0] sm:$0xf] }
  0xc6   :  { %99 = vst.msk [vmem:[#allocation2 + $0x28] sm:$0xf0] %vm98_vm9, %v80_v50  ;;  %137 = vst [vmem:[#allocation2 + $0x50] sm:$0xf] %v126_v51  ;;  %1924 = vmatprep.subr.msk.mxu0 %vm408_vm10, %v399_v53 }
  0xc7   :  { %97 = vst [vmem:[#allocation2 + $0x20] sm:$0xf0] %v86_v52  ;;  %1925 = vmatpush1.msk.msra.mxu0 %vm408_vm10, %v398_v54 }
  0xc8   :  { %v198_v33 = vpop.permute.xlu1 %197  ;;  %v159_v56 = vpop.permute.xlu0 %158  ;;  %1926 = vmatmul.mubr.msk.f32.vlgmr.msra.gmra.mrb[0].mxu0 %vm404_vm11, %v373_v55 }
  0xc9   :  { %v204_v27 = vsel %vm199_vm4, %v2515_v2, %v198_v33  ;;  %216 = vst.msk [vmem:[#allocation2 + $0x88] sm:$0xf] %vm58_vm0, %v198_v33  ;;  %v165_v57 = vsel %vm160_vm3, %v2506_v42, %v159_v56  ;;  %v401_v58 = vld [vmem:[#allocation2 + $0xd8] sm:$0xf]  ;;  %v400_v59 = vld [vmem:[#allocation2 + $0xd0] sm:$0xf]  ;;  %633 = vmatprep.mubr.f32.mxu0 %v2307_v9 }
  0xca   :  { %177 = vst.msk [vmem:[#allocation2 + $0x58] sm:$0xf0] %vm98_vm9, %v159_v56  ;;  %215 = vst [vmem:[#allocation2 + $0x80] sm:$0xf] %v204_v27  ;;  %1927 = vmatprep.subr.msk.mxu1 %vm408_vm10, %v401_v58 }
  0xcb   :  { %176 = vst [vmem:[#allocation2 + $0x50] sm:$0xf0] %v165_v57  ;;  %1928 = vmatpush1.msk.msra.mxu1 %vm408_vm10, %v400_v59 }
  0xcc   :  { %v276_v60 = vpop.permute.xlu1 %275  ;;  %v237_v61 = vpop.permute.xlu0 %236  ;;  %1929 = vmatmul.mubr.msk.f32.vlgmr.msra.gmra.mrb[0].mxu1 %vm404_vm11, %v373_v55 }
  0xcd   :  { %v282_v62 = vsel %vm277_vm6, %v2527_v18, %v276_v60  ;;  %294 = vst.msk [vmem:[#allocation2 + $0xb8] sm:$0xf] %vm58_vm0, %v276_v60  ;;  %v243_v42 = vsel %vm238_vm5, %v2522_v15, %v237_v61  ;;  %1220 = vmatprep.mubr.f32.mxu1 %v2307_v9  ;;  %v379_v63 = vld [vmem:[#allocation2 + $0x28] sm:$0xff]  ;;  %v672_v18 = vlaneseq }
  0xce   :  { %255 = vst.msk [vmem:[#allocation2 + $0x88] sm:$0xf0] %vm98_vm9, %v237_v61  ;;  %293 = vst [vmem:[#allocation2 + $0xb0] sm:$0xf] %v282_v62  ;;  %v378_v6 = vld [vmem:[#allocation2 + $0x20] sm:$0xff] }
  0xcf   :  { %254 = vst [vmem:[#allocation2 + $0x80] sm:$0xf0] %v243_v42  ;;  %v673_v19 = vshrl.u32 %v672_v18, 7  ;;  %v1713_v18 = vld [vmem:[%s3108_s7] sm:$0xff] }
  0xd0   :  { %v354_v0 = vpop.permute.xlu1 %353  ;;  %v315_v1 = vpop.permute.xlu0 %314 }
  0xd1   :  { %v385_v2 = vld [vmem:[#allocation2 + $0x58] sm:$0xff]  ;;  %v360_v3 = vsel %vm355_vm8, %v352_v38, %v354_v0  ;;  %372 = vst.msk [vmem:[#allocation2 + $0xe8] sm:$0xf] %vm58_vm0, %v354_v0  ;;  %v321_v4 = vsel %vm316_vm7, %v2534_v28, %v315_v1  ;;  %v674_v21 = vsub.s32 0, %v673_v19  ;;  %v678_v25 = vsub.s32 1, %v673_v19 }
  0xd2   :  { %333 = vst.msk [vmem:[#allocation2 + $0xb8] sm:$0xf0] %vm98_vm9, %v315_v1  ;;  %v2099_v5 = vpack.c.bf16 %v385_v2, %v379_v63  ;;  %v384_v7 = vld [vmem:[#allocation2 + $0x50] sm:$0xff]  ;;  %371 = vst [vmem:[#allocation2 + $0xe0] sm:$0xf] %v360_v3  ;;  %v682_v32 = vsub.s32 2, %v673_v19 }
  0xd3   :  { %332 = vst [vmem:[#allocation2 + $0xb0] sm:$0xf0] %v321_v4  ;;  %v2101_v8 = vpack.c.bf16 %v384_v7, %v378_v6  ;;  %v675_v31 = vrot.slane %v670_v24, %v674_v21  ;;  %v679_v36 = vrot.slane %v670_v24, %v678_v25  ;;  %v686_v37 = vsub.s32 3, %v673_v19 }
  0xd4   :  { %2100 = vmatprep.subr.bf16.mxu0 %v2099_v5  ;;  %v683_v46 = vrot.slane %v670_v24, %v682_v32  ;;  %v690_v54 = vsub.s32 4, %v673_v19  ;;  %v694_v33 = vsub.s32 5, %v673_v19  ;;  %v1823_v19 = vld [vmem:[%s3109_s11 + $0x8] sm:$0x3]  ;;  %vm1149_vm0 = vcmask 588800  }
  0xd5   :  { %2102 = vmatpush1.bf16.msra.mxu0 %v2101_v8  ;;  %v391_v10 = vld [vmem:[#allocation2 + $0x88] sm:$0xff]  ;;  %v687_v49 = vrot.slane %v670_v24, %v686_v37 }
  0xd6   :  { %v390_v13 = vld [vmem:[#allocation2 + $0x80] sm:$0xff]  ;;  %v691_v59 = vrot.slane %v670_v24, %v690_v54  ;;  %v695_v61 = vrot.slane %v670_v24, %v694_v33 }
  0xd8   :  { %v403_v16 = vld [vmem:[#allocation2 + $0xe8] sm:$0xf] }
  0xd9   :  { %v397_v11 = vld [vmem:[#allocation2 + $0xb8] sm:$0xff]  ;;  %v402_v17 = vld [vmem:[#allocation2 + $0xe0] sm:$0xf] }
  0xda   :  { %v2103_v12 = vpack.c.bf16 %v397_v11, %v391_v10  ;;  %v396_v14 = vld [vmem:[#allocation2 + $0xb0] sm:$0xff] }
  0xdb   :  { %v2105_v15 = vpack.c.bf16 %v396_v14, %v390_v13 }
  0xdc   :  { %2104 = vmatprep.subr.bf16.mxu0 %v2103_v12 }
  0xdd   :  { %2106 = vmatpush1.bf16.msra.mxu0 %v2105_v15  ;;  %v1700_v15 = vld [vmem:[%s3107_s6 + $0x8] sm:$0xff] }
  0xde   :  { %1930 = vmatprep.subr.msk.mxu0 %vm408_vm10, %v403_v16  ;;  %v1699_v16 = vld [vmem:[%s3107_s6] sm:$0xff] }
  0xe1   :  { %1931 = vmatpush1.msk.msra.mxu0 %vm408_vm10, %v402_v17  ;;  %v644_v20 = vpop.permute.xlu0 %643  ;;  %v656_v23 = vpop.permute.xlu1 %655  ;;  %v1714_v17 = vld [vmem:[%s3108_s7 + $0x8] sm:$0xff] }
  0xe2   :  { %1932 = vmatmul.mubr.msk.f32.vlgmr.msra.gmra.mrb[2].mxu0 %vm404_vm11, %v373_v55 }
  0xe3   :  { %1297 = vmatprep.mubr.f32.mxu0 %v2307_v9 }
 0x19b   :  { %v493_v22 = vpop.f32.mrb[0].mxu0 }
 0x19c   :  { %v646_v26 = vmul.f32 %v644_v20, %v493_v22  ;;  %v495_v28 = vpop.f32.mrb[1].mxu0 }
 0x19d   :  { %v647_v29 = vmul.f32 %v644_v20, %v495_v28 }
 0x19e   :  { %v658_v30 = vadd.f32 %v656_v23, %v646_v26 }
 0x19f   :  { %v564_v34 = vpop.f32.mrb[0].mxu1  ;;  %v659_v35 = vadd.f32 %v656_v23, %v647_v29 }
 0x1a0   :  { %v648_v38 = vmul.f32 %v644_v20, %v564_v34  ;;  %v566_v39 = vpop.f32.mrb[1].mxu1  ;;  %v664_v40 = vmax.f32 %v658_v30, 0.0 }
 0x1a1   :  { %v649_v41 = vmul.f32 %v644_v20, %v566_v39  ;;  %v665_v43 = vmax.f32 %v659_v35, 0.0 }
 0x1a2   :  { %v660_v44 = vadd.f32 %v656_v23, %v648_v38  ;;  %v702_v45 = vmul.f32 %v675_v31, %v664_v40 }
 0x1a3   :  { %v661_v47 = vadd.f32 %v656_v23, %v649_v41  ;;  %v703_v48 = vmul.f32 %v679_v36, %v665_v43 }
 0x1a4   :  { %v666_v50 = vmax.f32 %v660_v44, 0.0  ;;  %720 = vrot.lane.b32.xlu1 %v702_v45, %s2309_s1 }
 0x1a5   :  { %v667_v51 = vmax.f32 %v661_v47, 0.0  ;;  %722 = vrot.lane.b32.xlu0 %v703_v48, %s2309_s1 }
 0x1a6   :  { %v704_v52 = vmul.f32 %v683_v46, %v666_v50 }
 0x1a7   :  { %v705_v53 = vmul.f32 %v687_v49, %v667_v51 }
 0x1a8   :  { %724 = vrot.lane.b32.xlu1 %v704_v52, %s2309_s1 }
 0x1a9   :  { %726 = vrot.lane.b32.xlu0 %v705_v53, %s2309_s1 }
 0x1b5   :  { %v635_v55 = vpop.f32.mrb[2].mxu0 }
 0x1b6   :  { %v650_v56 = vmul.f32 %v644_v20, %v635_v55  ;;  %v637_v27 = vpop.f32.mrb[3].mxu0 }
 0x1b7   :  { %v651_v57 = vmul.f32 %v644_v20, %v637_v27  ;;  %v1822_v20 = vld [vmem:[%s3109_s11] sm:$0xff] }
 0x1b8   :  { %v662_v58 = vadd.f32 %v656_v23, %v650_v56 }
 0x1b9   :  { %v663_v60 = vadd.f32 %v656_v23, %v651_v57 }
 0x1ba   :  { %v668_v62 = vmax.f32 %v662_v58, 0.0 }
 0x1bb   :  { %v669_v42 = vmax.f32 %v663_v60, 0.0 }
 0x1bc   :  { %v706_v63 = vmul.f32 %v691_v59, %v668_v62 }
 0x1bd   :  { %v707_v0 = vmul.f32 %v695_v61, %v669_v42 }
 0x1be   :  { %728 = vrot.lane.b32.xlu1 %v706_v63, %s2309_s1 }
 0x1bf   :  { %730 = vrot.lane.b32.xlu0 %v707_v0, %s2309_s1 }
 0x216   :  { %v721_v1 = vpop.permute.xlu1 %720 }
 0x217   :  { %745 = vst.msk [vmem:[#allocation3] sm:$0xff] %vm744_vm12, %v721_v1  ;;  %v723_v2 = vpop.permute.xlu0 %722 }
 0x218   :  { %v2584_v3 = vsel %vm732_vm13, %v721_v1, %v723_v2 }
 0x21a   :  { %v725_v4 = vpop.permute.xlu1 %724 }
 0x21b   :  { %v2587_v5 = vsel %vm732_vm13, %v723_v2, %v725_v4  ;;  %v727_v6 = vpop.permute.xlu0 %726 }
 0x21c   :  { %v2590_v7 = vsel %vm732_vm13, %v725_v4, %v727_v6 }
 0x21e   :  { %v2592_v8 = vld [vmem:[#allocation3] sm:$0xff] }
 0x21f   :  { %777 = vrot.lane.b32.xlu1 %v2592_v8, %s2300_s28  ;;  %818 = vrot.lane.b32.xlu0 %v2592_v8, %s2299_s27 }
 0x223   :  { %859 = vrot.lane.b32.xlu1 %v2592_v8, %s2301_s0  ;;  %900 = vrot.lane.b32.xlu0 %v2592_v8, %s2302_s29 }
 0x227   :  { %941 = vrot.lane.b32.xlu1 %v2592_v8, %s2303_s30  ;;  %982 = vrot.lane.b32.xlu0 %v2592_v8, %s2304_s13 }
 0x22b   :  { %1023 = vrot.lane.b32.xlu1 %v2592_v8, %s2305_s14  ;;  %1064 = vrot.lane.b32.xlu0 %v2592_v8, %s2306_s15 }
 0x22f   :  { %779 = vrot.lane.b32.xlu1 %v2584_v3, %s2300_s28  ;;  %781 = vrot.lane.b32.xlu0 %v2587_v5, %s2300_s28 }
 0x230   :  { %v729_v10 = vpop.permute.xlu1 %728 }
 0x231   :  { %v2615_v11 = vsel %vm732_vm13, %v727_v6, %v729_v10  ;;  %v731_v12 = vpop.permute.xlu0 %730  ;;  %v2729_v6 = vld [vmem:[%s3110_s5] sm:$0xff] }
 0x232   :  { %v737_v13 = vsel %vm732_vm13, %v729_v10, %v731_v12 }
 0x233   :  { %751 = vst.msk [vmem:[#allocation3 + $0x28] sm:$0xff] %vm750_vm14, %v737_v13  ;;  %822 = vrot.lane.b32.xlu1 %v2587_v5, %s2299_s27  ;;  %820 = vrot.lane.b32.xlu0 %v2584_v3, %s2299_s27 }
 0x237   :  { %863 = vrot.lane.b32.xlu1 %v2587_v5, %s2301_s0  ;;  %861 = vrot.lane.b32.xlu0 %v2584_v3, %s2301_s0 }
 0x23a   :  { %v757_v14 = vld [vmem:[#allocation3 + $0x28] sm:$0xff] }
 0x23b   :  { %764 = vst.msk [vmem:[#allocation4 + $0x28] sm:$0xff] %vm763_vm15, %v757_v14  ;;  %904 = vrot.lane.b32.xlu1 %v2587_v5, %s2302_s29  ;;  %902 = vrot.lane.b32.xlu0 %v2584_v3, %s2302_s29 }
 0x23f   :  { %945 = vrot.lane.b32.xlu1 %v2587_v5, %s2303_s30  ;;  %943 = vrot.lane.b32.xlu0 %v2584_v3, %s2303_s30 }
 0x243   :  { %986 = vrot.lane.b32.xlu1 %v2587_v5, %s2304_s13  ;;  %984 = vrot.lane.b32.xlu0 %v2584_v3, %s2304_s13 }
 0x247   :  { %1027 = vrot.lane.b32.xlu1 %v2587_v5, %s2305_s14  ;;  %1025 = vrot.lane.b32.xlu0 %v2584_v3, %s2305_s14 }
 0x24b   :  { %1068 = vrot.lane.b32.xlu1 %v2587_v5, %s2306_s15  ;;  %1066 = vrot.lane.b32.xlu0 %v2584_v3, %s2306_s15 }
 0x24f   :  { %783 = vrot.lane.b32.xlu1 %v2590_v7, %s2300_s28  ;;  %906 = vrot.lane.b32.xlu0 %v2590_v7, %s2302_s29 }
 0x253   :  { %824 = vrot.lane.b32.xlu1 %v2590_v7, %s2299_s27  ;;  %947 = vrot.lane.b32.xlu0 %v2590_v7, %s2303_s30 }
 0x257   :  { %865 = vrot.lane.b32.xlu1 %v2590_v7, %s2301_s0  ;;  %988 = vrot.lane.b32.xlu0 %v2590_v7, %s2304_s13 }
 0x25b   :  { %908 = vrot.lane.b32.xlu1 %v2615_v11, %s2302_s29  ;;  %1029 = vrot.lane.b32.xlu0 %v2590_v7, %s2305_s14 }
 0x25f   :  { %949 = vrot.lane.b32.xlu1 %v2615_v11, %s2303_s30  ;;  %785 = vrot.lane.b32.xlu0 %v2615_v11, %s2300_s28 }
 0x263   :  { %990 = vrot.lane.b32.xlu1 %v2615_v11, %s2304_s13  ;;  %826 = vrot.lane.b32.xlu0 %v2615_v11, %s2299_s27 }
 0x267   :  { %1031 = vrot.lane.b32.xlu1 %v2615_v11, %s2305_s14  ;;  %867 = vrot.lane.b32.xlu0 %v2615_v11, %s2301_s0 }
 0x26b   :  { %828 = vrot.lane.b32.xlu0 %v757_v14, %s2299_s27  ;;  %787 = vrot.lane.b32.xlu1 %v757_v14, %s2300_s28 }
 0x26f   :  { %910 = vrot.lane.b32.xlu0 %v757_v14, %s2302_s29  ;;  %869 = vrot.lane.b32.xlu1 %v757_v14, %s2301_s0 }
 0x273   :  { %992 = vrot.lane.b32.xlu0 %v757_v14, %s2304_s13  ;;  %951 = vrot.lane.b32.xlu1 %v757_v14, %s2303_s30 }
 0x277   :  { %1070 = vrot.lane.b32.xlu0 %v2590_v7, %s2306_s15  ;;  %1033 = vrot.lane.b32.xlu1 %v757_v14, %s2305_s14 }
 0x27b   :  { %1074 = vrot.lane.b32.xlu0 %v757_v14, %s2306_s15  ;;  %1072 = vrot.lane.b32.xlu1 %v2615_v11, %s2306_s15  ;;  %v2739_v14 = vld [vmem:[%s3110_s5 + $0x8] sm:$0xff] }
 0x27f   :  { %1708 = vperm.xlu0 %2291, %v1700_v15   ;;  %1703 = vperm.xlu1 %2292, %v1699_v16  }
 0x283   :  { %1722 = vperm.xlu0 %2291, %v1714_v17   ;;  %1717 = vperm.xlu1 %2292, %v1713_v18  }
 0x287   :  { %1831 = vperm.xlu0 %2291, %v1823_v19   ;;  %1826 = vperm.xlu1 %2292, %v1822_v20  }
 0x291   :  { %v778_v21 = vpop.permute.xlu1 %777  ;;  %v819_v22 = vpop.permute.xlu0 %818 }
 0x295   :  { %v860_v23 = vpop.permute.xlu1 %859  ;;  %v901_v24 = vpop.permute.xlu0 %900 }
 0x299   :  { %v942_v25 = vpop.permute.xlu1 %941  ;;  %v983_v26 = vpop.permute.xlu0 %982 }
 0x29d   :  { %v1024_v28 = vpop.permute.xlu1 %1023  ;;  %v1065_v29 = vpop.permute.xlu0 %1064 }
 0x2a1   :  { %v780_v30 = vpop.permute.xlu1 %779  ;;  %v782_v31 = vpop.permute.xlu0 %781 }
 0x2a2   :  { %v789_v32 = vsel %vm81_vm2, %v778_v21, %v780_v30  ;;  %v790_v34 = vsel %vm81_vm2, %v780_v30, %v782_v31 }
 0x2a3   :  { %v2107_v35 = vpack.c.bf16 %v790_v34, %v2584_v3  ;;  %v2109_v36 = vpack.c.bf16 %v789_v32, %v2592_v8 }
 0x2a5   :  { %v823_v37 = vpop.permute.xlu1 %822  ;;  %v821_v38 = vpop.permute.xlu0 %820  ;;  %2108 = vmatprep.subr.bf16.mxu1 %v2107_v35 }
 0x2a6   :  { %v830_v39 = vsel %vm121_vm1, %v819_v22, %v821_v38  ;;  %v831_v40 = vsel %vm121_vm1, %v821_v38, %v823_v37  ;;  %2110 = vmatpush1.bf16.msra.mxu1 %v2109_v36 }
 0x2a9   :  { %v864_v41 = vpop.permute.xlu1 %863  ;;  %v862_v43 = vpop.permute.xlu0 %861 }
 0x2aa   :  { %v871_v44 = vsel %vm160_vm3, %v860_v23, %v862_v43  ;;  %v872_v45 = vsel %vm160_vm3, %v862_v43, %v864_v41 }
 0x2ab   :  { %v2111_v46 = vpack.c.bf16 %v872_v45, %v831_v40  ;;  %v2113_v47 = vpack.c.bf16 %v871_v44, %v830_v39 }
 0x2ad   :  { %v905_v48 = vpop.permute.xlu1 %904  ;;  %v903_v49 = vpop.permute.xlu0 %902  ;;  %2112 = vmatprep.subr.bf16.mxu1 %v2111_v46 }
 0x2ae   :  { %v912_v50 = vsel %vm199_vm4, %v901_v24, %v903_v49  ;;  %v913_v51 = vsel %vm199_vm4, %v903_v49, %v905_v48  ;;  %2114 = vmatpush1.bf16.msra.mxu1 %v2113_v47 }
 0x2b1   :  { %v946_v52 = vpop.permute.xlu1 %945  ;;  %v944_v53 = vpop.permute.xlu0 %943 }
 0x2b2   :  { %v953_v54 = vsel %vm238_vm5, %v942_v25, %v944_v53  ;;  %v954_v55 = vsel %vm238_vm5, %v944_v53, %v946_v52 }
 0x2b3   :  { %v2115_v33 = vpack.c.bf16 %v954_v55, %v913_v51  ;;  %v2117_v56 = vpack.c.bf16 %v953_v54, %v912_v50 }
 0x2b5   :  { %v987_v27 = vpop.permute.xlu1 %986  ;;  %v985_v57 = vpop.permute.xlu0 %984  ;;  %2116 = vmatprep.subr.bf16.mxu1 %v2115_v33 }
 0x2b6   :  { %v994_v58 = vsel %vm277_vm6, %v983_v26, %v985_v57  ;;  %v995_v59 = vsel %vm277_vm6, %v985_v57, %v987_v27  ;;  %2118 = vmatpush1.bf16.msra.mxu1 %v2117_v56 }
 0x2b9   :  { %v1028_v60 = vpop.permute.xlu1 %1027  ;;  %v1026_v61 = vpop.permute.xlu0 %1025 }
 0x2ba   :  { %v1035_v62 = vsel %vm316_vm7, %v1024_v28, %v1026_v61  ;;  %v1036_v42 = vsel %vm316_vm7, %v1026_v61, %v1028_v60 }
 0x2bb   :  { %v2119_v63 = vpack.c.bf16 %v1036_v42, %v995_v59  ;;  %v2121_v0 = vpack.c.bf16 %v1035_v62, %v994_v58 }
 0x2bd   :  { %v2721_v1 = vpop.permute.xlu1 %1068  ;;  %v1067_v2 = vpop.permute.xlu0 %1066  ;;  %2120 = vmatprep.subr.bf16.mxu1 %v2119_v63 }
 0x2be   :  { %v1076_v3 = vsel %vm355_vm8, %v1065_v29, %v1067_v2  ;;  %v1077_v4 = vsel %vm355_vm8, %v1067_v2, %v2721_v1  ;;  %2122 = vmatpush1.bf16.msra.mxu1 %v2121_v0 }
 0x2bf   :  { %1172 = vmatprep.subr.mxu1 %v1077_v4 }
 0x2c1   :  { %v784_v8 = vpop.permute.xlu1 %783  ;;  %v907_v10 = vpop.permute.xlu0 %906 }
 0x2c2   :  { %v791_v12 = vsel %vm81_vm2, %v782_v31, %v784_v8  ;;  %v914_v13 = vsel %vm199_vm4, %v905_v48, %v907_v10  ;;  %1173 = vmatpush1.msra.mxu1 %v1076_v3 }
 0x2c3   :  { %1933 = vmatmul.mubr.msk.f32.vlgmr.msra.gmra.mrb[2].mxu1 %vm1149_vm0, %v2729_v6  ;;  %v2125_v34 = vpack.c.bf16 %v791_v12, %v2587_v5  ;;  %v1387_v12 = vld [vmem:[%s3111_s8] sm:$0xff] }
 0x2c4   :  { %1226 = vmatprep.mubr.f32.mxu1 %v2307_v9 }
 0x2c5   :  { %v825_v15 = vpop.permute.xlu1 %824  ;;  %v948_v16 = vpop.permute.xlu0 %947 }
 0x2c6   :  { %v832_v17 = vsel %vm121_vm1, %v823_v37, %v825_v15  ;;  %v955_v18 = vsel %vm238_vm5, %v946_v52, %v948_v16 }
 0x2c7   :  { %1934 = vmatmul.mubr.msk.f32.gmra.mrb[4].mxu1 %vm1149_vm0, %v2739_v14  ;;  %v2133_v49 = vpack.c.bf16 %v955_v18, %v914_v13  ;;  %v1388_v13 = vld [vmem:[%s3111_s8 + $0x8] sm:$0xff] }
 0x2c8   :  { %1374 = vmatprep.mubr.f32.mxu1 %v2307_v9 }
 0x2c9   :  { %v866_v19 = vpop.permute.xlu1 %865  ;;  %v989_v20 = vpop.permute.xlu0 %988 }
 0x2ca   :  { %v873_v21 = vsel %vm160_vm3, %v864_v41, %v866_v19  ;;  %v996_v22 = vsel %vm277_vm6, %v987_v27, %v989_v20  ;;  %v1100_v27 = vld [vmem:[#allocation4 + $0x28] sm:$0xff] }
 0x2cb   :  { %v2129_v45 = vpack.c.bf16 %v873_v21, %v832_v17 }
 0x2cd   :  { %v909_v23 = vpop.permute.xlu1 %908  ;;  %v1030_v24 = vpop.permute.xlu0 %1029 }
 0x2ce   :  { %v915_v25 = vsel %vm199_vm4, %v907_v10, %v909_v23  ;;  %v1037_v26 = vsel %vm316_vm7, %v1028_v60, %v1030_v24  ;;  %v1403_v10 = vld [vmem:[%s3111_s8 + $0x80] sm:$0xff] }
 0x2cf   :  { %v2137_v55 = vpack.c.bf16 %v1037_v26, %v996_v22 }
 0x2d1   :  { %v950_v28 = vpop.permute.xlu1 %949  ;;  %v786_v29 = vpop.permute.xlu0 %785 }
 0x2d2   :  { %v956_v30 = vsel %vm238_vm5, %v948_v16, %v950_v28  ;;  %v792_v31 = vsel %vm81_vm2, %v784_v8, %v786_v29 }
 0x2d3   :  { %v2123_v32 = vpack.c.bf16 %v792_v31, %v2590_v7  ;;  %v2131_v5 = vpack.c.bf16 %v956_v30, %v915_v25  ;;  %v2157_v25 = vpack.c.bf16 %v1388_v13, %v1387_v12  ;;  %v1407_v30 = vld [vmem:[%s3111_s8 + $0xa0] sm:$0xff]  ;;  %v1420_v13 = vld [vmem:[%s3111_s8 + $0x108] sm:$0xff] }
 0x2d4   :  { %v1419_v12 = vld [vmem:[%s3111_s8 + $0x100] sm:$0xff] }
 0x2d5   :  { %v991_v35 = vpop.permute.xlu1 %990  ;;  %v827_v36 = vpop.permute.xlu0 %826  ;;  %2124 = vmatprep.subr.bf16.mxu0 %v2123_v32 }
 0x2d6   :  { %v997_v37 = vsel %vm277_vm6, %v989_v20, %v991_v35  ;;  %v833_v38 = vsel %vm121_vm1, %v825_v15, %v827_v36  ;;  %2126 = vmatpush1.bf16.msra.mxu0 %v2125_v34  ;;  %v1408_v34 = vld [vmem:[%s3111_s8 + $0xa8] sm:$0xff] }
 0x2d9   :  { %v1032_v39 = vpop.permute.xlu1 %1031  ;;  %v868_v40 = vpop.permute.xlu0 %867 }
 0x2da   :  { %v1038_v41 = vsel %vm316_vm7, %v1030_v24, %v1032_v39  ;;  %v874_v43 = vsel %vm160_vm3, %v866_v19, %v868_v40  ;;  %v1406_v19 = vld [vmem:[%s3111_s8 + $0x98] sm:$0xff] }
 0x2db   :  { %v2127_v44 = vpack.c.bf16 %v874_v43, %v833_v38  ;;  %v2135_v52 = vpack.c.bf16 %v1038_v41, %v997_v37  ;;  %v2163_v38 = vpack.c.bf16 %v1408_v34, %v1407_v30  ;;  %v1409_v43 = vld [vmem:[%s3111_s8 + $0xb0] sm:$0xff] }
 0x2dd   :  { %v788_v46 = vpop.permute.xlu1 %787  ;;  %v829_v7 = vpop.permute.xlu0 %828  ;;  %2128 = vmatprep.subr.bf16.mxu0 %v2127_v44  ;;  %v1410_v44 = vld [vmem:[%s3111_s8 + $0xb8] sm:$0xff] }
 0x2de   :  { %v793_v47 = vsel %vm81_vm2, %v786_v29, %v788_v46  ;;  %805 = vst.msk [vmem:[#allocation4 + $0x58] sm:$0xff] %vm763_vm15, %v788_v46  ;;  %v834_v48 = vsel %vm121_vm1, %v827_v36, %v829_v7  ;;  %846 = vst.msk [vmem:[#allocation4 + $0x88] sm:$0xff] %vm763_vm15, %v829_v7  ;;  %2130 = vmatpush1.bf16.msra.mxu0 %v2129_v45  ;;  %v1390_v29 = vld [vmem:[%s3111_s8 + $0x18] sm:$0xff]  ;;  %v2167_v46 = vpack.c.bf16 %v1410_v44, %v1409_v43  ;;  %v1393_v7 = vld [vmem:[%s3111_s8 + $0x30] sm:$0xff]  ;;  %vm1834_vm1 = vcmask 130048  }
 0x2df   :  { %2132 = vmatprep.subr.bf16.mxu0 %v2131_v5  ;;  %v2141_v61 = vpack.c.bf16 %v793_v47, %v2615_v11  ;;  %v1404_v11 = vld [vmem:[%s3111_s8 + $0x88] sm:$0xff]  ;;  %v1394_v5 = vld [vmem:[%s3111_s8 + $0x38] sm:$0xff]  ;;  %v1411_v47 = vld [vmem:[%s3111_s8 + $0xc0] sm:$0xff]  ;;  %vm1918_vm2 = vcmask 9216  }
 0x2e0   :  { %v1446_v43 = vld [vmem:[%s3111_s8 + $0x1d8] sm:$0xff] }
 0x2e1   :  { %v870_v50 = vpop.permute.xlu1 %869  ;;  %v911_v51 = vpop.permute.xlu0 %910 }
 0x2e2   :  { %v875_v53 = vsel %vm160_vm3, %v868_v40, %v870_v50  ;;  %887 = vst.msk [vmem:[#allocation4 + $0xb8] sm:$0xff] %vm763_vm15, %v870_v50  ;;  %v916_v54 = vsel %vm199_vm4, %v909_v23, %v911_v51  ;;  %928 = vst.msk [vmem:[#allocation4 + $0xe8] sm:$0xff] %vm763_vm15, %v911_v51  ;;  %2134 = vmatpush1.bf16.msra.mxu0 %v2133_v49  ;;  %v2155_v23 = vpack.c.bf16 %v1404_v11, %v1403_v10  ;;  %v1392_v40 = vld [vmem:[%s3111_s8 + $0x28] sm:$0xff]  ;;  %v1395_v51 = vld [vmem:[%s3111_s8 + $0x40] sm:$0xff]  ;;  %v2310_v11 = vmov 0.0|0.0  }
 0x2e3   :  { %2136 = vmatprep.subr.bf16.mxu0 %v2135_v52  ;;  %v2145_v8 = vpack.c.bf16 %v875_v53, %v834_v48  ;;  %v1412_v48 = vld [vmem:[%s3111_s8 + $0xc8] sm:$0xff]  ;;  %v2169_v49 = vpack.c.bf16 %v1394_v5, %v1393_v7  ;;  %v1413_v53 = vld [vmem:[%s3111_s8 + $0xd0] sm:$0xff]  ;;  %v1447_v5 = vld [vmem:[%s3111_s8 + $0x1e0] sm:$0xff]  ;;  %vm1916_vm3 = vcmask 15360  }
 0x2e4   :  { %v2171_v50 = vpack.c.bf16 %v1412_v48, %v1411_v47  ;;  %v1396_v52 = vld [vmem:[%s3111_s8 + $0x48] sm:$0xff] }
 0x2e5   :  { %v952_v33 = vpop.permute.xlu1 %951  ;;  %v993_v56 = vpop.permute.xlu0 %992  ;;  %v1106_v57 = vld [vmem:[#allocation4 + $0x58] sm:$0xff]  ;;  %v1112_v63 = vld [vmem:[#allocation4 + $0x88] sm:$0xff] }
 0x2e6   :  { %v957_v58 = vsel %vm238_vm5, %v950_v28, %v952_v33  ;;  %969 = vst.msk [vmem:[#allocation4 + $0x118] sm:$0xff] %vm763_vm15, %v952_v33  ;;  %v998_v59 = vsel %vm277_vm6, %v991_v35, %v993_v56  ;;  %1010 = vst.msk [vmem:[#allocation4 + $0x148] sm:$0xff] %vm763_vm15, %v993_v56  ;;  %v2139_v60 = vpack.c.bf16 %v1106_v57, %v1100_v27  ;;  %2138 = vmatpush1.bf16.msra.mxu0 %v2137_v55  ;;  %v1389_v28 = vld [vmem:[%s3111_s8 + $0x10] sm:$0xff]  ;;  %v1398_v56 = vld [vmem:[%s3111_s8 + $0x58] sm:$0xff] }
 0x2e7   :  { %v2149_v24 = vpack.c.bf16 %v957_v58, %v916_v54  ;;  %v2161_v37 = vpack.c.bf16 %v1390_v29, %v1389_v28  ;;  %v2173_v54 = vpack.c.bf16 %v1396_v52, %v1395_v51  ;;  %v1397_v33 = vld [vmem:[%s3111_s8 + $0x50] sm:$0xff]  ;;  %v1415_v27 = vld [vmem:[%s3111_s8 + $0xe0] sm:$0xff]  ;;  %v1442_v29 = vld [vmem:[%s3111_s8 + $0x1b8] sm:$0xff] }
 0x2e8   :  { %2140 = vmatprep.subr.bf16.mxu1 %v2139_v60  ;;  %v2177_v57 = vpack.c.bf16 %v1398_v56, %v1397_v33  ;;  %v1400_v60 = vld [vmem:[%s3111_s8 + $0x68] sm:$0xff]  ;;  %v1441_v28 = vld [vmem:[%s3111_s8 + $0x1b0] sm:$0xff]  ;;  %v1451_v56 = vld [vmem:[%s3111_s8 + $0x200] sm:$0xff] }
 0x2e9   :  { %v1034_v62 = vpop.permute.xlu1 %1033  ;;  %2142 = vmatpush1.bf16.msra.mxu1 %v2141_v61  ;;  %v1071_v42 = vpop.permute.xlu0 %1070  ;;  %v1118_v0 = vld [vmem:[#allocation4 + $0xb8] sm:$0xff]  ;;  %v1124_v17 = vld [vmem:[#allocation4 + $0xe8] sm:$0xff]  ;;  %v1417_v61 = vld [vmem:[%s3111_s8 + $0xf0] sm:$0xff]  ;;  %v2199_v30 = vpack.c.bf16 %v1442_v29, %v1441_v28 }
 0x2ea   :  { %v1039_v2 = vsel %vm316_vm7, %v1032_v39, %v1034_v62  ;;  %1051 = vst.msk [vmem:[#allocation4 + $0x178] sm:$0xff] %vm763_vm15, %v1034_v62  ;;  %v1078_v3 = vsel %vm355_vm8, %v2721_v1, %v1071_v42  ;;  %v2143_v4 = vpack.c.bf16 %v1118_v0, %v1112_v63  ;;  %v1405_v1 = vld [vmem:[%s3111_s8 + $0x90] sm:$0xff]  ;;  %v1391_v39 = vld [vmem:[%s3111_s8 + $0x20] sm:$0xff]  ;;  %v1418_v62 = vld [vmem:[%s3111_s8 + $0xf8] sm:$0xff] }
 0x2eb   :  { %v2159_v26 = vpack.c.bf16 %v1406_v19, %v1405_v1  ;;  %v2153_v36 = vpack.c.bf16 %v1039_v2, %v998_v59  ;;  %v2165_v45 = vpack.c.bf16 %v1392_v40, %v1391_v39  ;;  %v1399_v59 = vld [vmem:[%s3111_s8 + $0x60] sm:$0xff]  ;;  %v2183_v63 = vpack.c.bf16 %v1418_v62, %v1417_v61  ;;  %v1401_v0 = vld [vmem:[%s3111_s8 + $0x70] sm:$0xff]  ;;  %v1402_v2 = vld [vmem:[%s3111_s8 + $0x78] sm:$0xff] }
 0x2ec   :  { %2144 = vmatprep.subr.bf16.mxu1 %v2143_v4  ;;  %v1435_v4 = vld [vmem:[%s3111_s8 + $0x180] sm:$0xff]  ;;  %v2189_v1 = vpack.c.bf16 %v1420_v13, %v1419_v12  ;;  %v1422_v19 = vld [vmem:[%s3111_s8 + $0x118] sm:$0xff]  ;;  %v1428_v39 = vld [vmem:[%s3111_s8 + $0x148] sm:$0xff] }
 0x2ed   :  { %v1073_v15 = vpop.permute.xlu1 %1072  ;;  %2146 = vmatpush1.bf16.msra.mxu1 %v2145_v8  ;;  %v1075_v16 = vpop.permute.xlu0 %1074  ;;  %v1130_v18 = vld [vmem:[#allocation4 + $0x118] sm:$0xff]  ;;  %v1136_v31 = vld [vmem:[#allocation4 + $0x148] sm:$0xff]  ;;  %v1449_v52 = vld [vmem:[%s3111_s8 + $0x1f0] sm:$0xff] }
 0x2ee   :  { %v1079_v20 = vsel %vm355_vm8, %v1071_v42, %v1073_v15  ;;  %v1080_v21 = vsel %vm355_vm8, %v1073_v15, %v1075_v16  ;;  %1092 = vst.msk [vmem:[#allocation4 + $0x1a8] sm:$0xff] %vm763_vm15, %v1075_v16  ;;  %v2147_v22 = vpack.c.bf16 %v1130_v18, %v1124_v17  ;;  %v2181_v42 = vpack.c.bf16 %v1400_v60, %v1399_v59  ;;  %v1436_v8 = vld [vmem:[%s3111_s8 + $0x188] sm:$0xff]  ;;  %v1437_v15 = vld [vmem:[%s3111_s8 + $0x190] sm:$0xff]  ;;  %v1438_v16 = vld [vmem:[%s3111_s8 + $0x198] sm:$0xff] }
 0x2ef   :  { %1249 = vmatprep.subr.mxu0 %v1079_v20  ;;  %v2187_v10 = vpack.c.bf16 %v1436_v8, %v1435_v4  ;;  %v2191_v17 = vpack.c.bf16 %v1438_v16, %v1437_v15  ;;  %v1421_v18 = vld [vmem:[%s3111_s8 + $0x110] sm:$0xff]  ;;  %v1448_v47 = vld [vmem:[%s3111_s8 + $0x1e8] sm:$0xff]  ;;  %v1454_v60 = vld [vmem:[%s3111_s8 + $0x218] sm:$0xff] }
 0x2f0   :  { %2148 = vmatprep.subr.bf16.mxu1 %v2147_v22  ;;  %1250 = vmatpush1.msra.mxu0 %v1078_v3  ;;  %v2185_v3 = vpack.c.bf16 %v1402_v2, %v1401_v0  ;;  %v2193_v20 = vpack.c.bf16 %v1422_v19, %v1421_v18  ;;  %v1440_v22 = vld [vmem:[%s3111_s8 + $0x1a8] sm:$0xff]  ;;  %v2211_v48 = vpack.c.bf16 %v1448_v47, %v1447_v5  ;;  %v1453_v59 = vld [vmem:[%s3111_s8 + $0x210] sm:$0xff]  ;;  %v1458_v4 = vld [vmem:[%s3111_s8 + $0x238] sm:$0xff] }
 0x2f1   :  { %2150 = vmatpush1.bf16.msra.mxu1 %v2149_v24  ;;  %v1142_v32 = vld [vmem:[#allocation4 + $0x178] sm:$0xff]  ;;  %1935 = vmatmul.mubr.msk.f32.vlgmr.msra.gmra.mrb[4].mxu0 %vm1149_vm0, %v2729_v6  ;;  %v1423_v24 = vld [vmem:[%s3111_s8 + $0x120] sm:$0xff]  ;;  %v2223_v61 = vpack.c.bf16 %v1454_v60, %v1453_v59  ;;  %v1460_v12 = vld [vmem:[%s3111_s8 + $0x248] sm:$0xff] }
 0x2f2   :  { %v2151_v35 = vpack.c.bf16 %v1142_v32, %v1136_v31  ;;  %1303 = vmatprep.mubr.f32.mxu0 %v2307_v9  ;;  %2156 = vmatprep.subr.bf16.mxu0 %v2155_v23  ;;  %v1425_v31 = vld [vmem:[%s3111_s8 + $0x130] sm:$0xff]  ;;  %v1426_v32 = vld [vmem:[%s3111_s8 + $0x138] sm:$0xff]  ;;  %v1464_v18 = vld [vmem:[%s3111_s8 + $0x268] sm:$0xff] }
 0x2f3   :  { %2158 = vmatpush3.bf16.msra.mxu0 %v2157_v25  ;;  %v1424_v25 = vld [vmem:[%s3111_s8 + $0x128] sm:$0xff]  ;;  %v2201_v34 = vpack.c.bf16 %v1426_v32, %v1425_v31  ;;  %v1462_v15 = vld [vmem:[%s3111_s8 + $0x258] sm:$0xff]  ;;  %v1729_v31 = vld [vmem:[%s3112_s9] sm:$0xff] }
 0x2f4   :  { %2152 = vmatprep.subr.bf16.mxu1 %v2151_v35  ;;  %2160 = vmatprep.subr.bf16.mxu0 %v2159_v26  ;;  %v2197_v26 = vpack.c.bf16 %v1424_v25, %v1423_v24  ;;  %v1443_v35 = vld [vmem:[%s3111_s8 + $0x1c0] sm:$0xff]  ;;  %v1730_v32 = vld [vmem:[%s3112_s9 + $0x8] sm:$0xff]  ;;  %v1739_v5 = vld [vmem:[%s3112_s9 + $0x50] sm:$0xff] }
 0x2f5   :  { %2154 = vmatpush1.bf16.msra.mxu1 %v2153_v36  ;;  %v1148_v41 = vld [vmem:[#allocation4 + $0x1a8] sm:$0xff]  ;;  %1936 = vmatmul.mubr.msk.f32.gmra.mrb[6].mxu0 %vm1149_vm0, %v2739_v14  ;;  %v1740_v47 = vld [vmem:[%s3112_s9 + $0x58] sm:$0xff] }
 0x2f6   :  { %1326 = vmatprep.subr.mxu1 %v1148_v41  ;;  %v1444_v36 = vld [vmem:[%s3111_s8 + $0x1c8] sm:$0xff]  ;;  %v1445_v41 = vld [vmem:[%s3111_s8 + $0x1d0] sm:$0xff] }
 0x2f7   :  { %2162 = vmatpush3.bf16.msra.mxu0 %v2161_v37  ;;  %v2203_v37 = vpack.c.bf16 %v1444_v36, %v1443_v35  ;;  %v2207_v44 = vpack.c.bf16 %v1446_v43, %v1445_v41  ;;  %v2243_v35 = vpack.c.bf16 %v1730_v32, %v1729_v31  ;;  %v1732_v36 = vld [vmem:[%s3112_s9 + $0x18] sm:$0xff]  ;;  %v1735_v41 = vld [vmem:[%s3112_s9 + $0x30] sm:$0xff] }
 0x2f8   :  { %2164 = vmatprep.subr.bf16.mxu0 %v2163_v38  ;;  %v1427_v38 = vld [vmem:[%s3111_s8 + $0x140] sm:$0xff]  ;;  %v1736_v43 = vld [vmem:[%s3112_s9 + $0x38] sm:$0xff] }
 0x2f9   :  { %1327 = vmatpush1.msra.mxu1 %v1080_v21  ;;  %v1439_v21 = vld [vmem:[%s3111_s8 + $0x1a0] sm:$0xff]  ;;  %v2205_v40 = vpack.c.bf16 %v1428_v39, %v1427_v38  ;;  %v1734_v39 = vld [vmem:[%s3112_s9 + $0x28] sm:$0xff] }
 0x2fa   :  { %1937 = vmatmul.mubr.msk.f32.vlgmr.msra.gmra.mrb[6].mxu1 %vm1149_vm0, %v2729_v6  ;;  %v1414_v6 = vld [vmem:[%s3111_s8 + $0xd8] sm:$0xff]  ;;  %2188 = vmatprep.subr.bf16.mxu1 %v2187_v10  ;;  %v2195_v23 = vpack.c.bf16 %v1440_v22, %v1439_v21  ;;  %v1459_v10 = vld [vmem:[%s3111_s8 + $0x240] sm:$0xff] }
 0x2fb   :  { %1380 = vmatprep.mubr.f32.mxu1 %v2307_v9  ;;  %2166 = vmatpush3.bf16.msra.mxu0 %v2165_v45  ;;  %v2175_v55 = vpack.c.bf16 %v1414_v6, %v1413_v53  ;;  %v1429_v45 = vld [vmem:[%s3111_s8 + $0x150] sm:$0xff]  ;;  %v1450_v53 = vld [vmem:[%s3111_s8 + $0x1f8] sm:$0xff]  ;;  %v2232_v13 = vpack.c.bf16 %v1460_v12, %v1459_v10  ;;  %v1733_v38 = vld [vmem:[%s3112_s9 + $0x20] sm:$0xff] }
 0x2fc   :  { %2168 = vmatprep.subr.bf16.mxu0 %v2167_v46  ;;  %2190 = vmatpush3.bf16.msra.mxu1 %v2189_v1  ;;  %v1430_v46 = vld [vmem:[%s3111_s8 + $0x158] sm:$0xff]  ;;  %v2215_v6 = vpack.c.bf16 %v1450_v53, %v1449_v52  ;;  %v1461_v1 = vld [vmem:[%s3111_s8 + $0x250] sm:$0xff] }
 0x2fd   :  { %2192 = vmatprep.subr.bf16.mxu1 %v2191_v17  ;;  %v2209_v7 = vpack.c.bf16 %v1430_v46, %v1429_v45  ;;  %v2235_v16 = vpack.c.bf16 %v1462_v15, %v1461_v1  ;;  %v1463_v17 = vld [vmem:[%s3111_s8 + $0x260] sm:$0xff]  ;;  %v1466_v21 = vld [vmem:[%s3111_s8 + $0x278] sm:$0xff]  ;;  %v1738_v46 = vld [vmem:[%s3112_s9 + $0x48] sm:$0xff] }
 0x2fe   :  { %1938 = vmatmul.mubr.msk.f32.gmra.mrb[8].mxu1 %vm1149_vm0, %v2739_v14  ;;  %v1416_v14 = vld [vmem:[%s3111_s8 + $0xe8] sm:$0xff]  ;;  %v2238_v19 = vpack.c.bf16 %v1464_v18, %v1463_v17  ;;  %v1737_v45 = vld [vmem:[%s3112_s9 + $0x40] sm:$0xff]  ;;  %v1743_v52 = vld [vmem:[%s3112_s9 + $0x70] sm:$0xff] }
 0x2ff   :  { %2170 = vmatpush3.bf16.msra.mxu0 %v2169_v49  ;;  %v2179_v58 = vpack.c.bf16 %v1416_v14, %v1415_v27  ;;  %v1431_v49 = vld [vmem:[%s3111_s8 + $0x160] sm:$0xff]  ;;  %v1452_v27 = vld [vmem:[%s3111_s8 + $0x208] sm:$0xff]  ;;  %v1744_v53 = vld [vmem:[%s3112_s9 + $0x78] sm:$0xff] }
 0x300   :  { %2172 = vmatprep.subr.bf16.mxu0 %v2171_v50  ;;  %2194 = vmatpush3.bf16.msra.mxu1 %v2193_v20  ;;  %v1432_v50 = vld [vmem:[%s3111_s8 + $0x168] sm:$0xff]  ;;  %v1465_v20 = vld [vmem:[%s3111_s8 + $0x270] sm:$0xff] }
 0x301   :  { %2196 = vmatprep.subr.bf16.mxu1 %v2195_v23  ;;  %v2213_v51 = vpack.c.bf16 %v1432_v50, %v1431_v49  ;;  %v2241_v22 = vpack.c.bf16 %v1466_v21, %v1465_v20  ;;  %v1467_v23 = vld [vmem:[%s3111_s8 + $0x280] sm:$0xff]  ;;  %v1742_v50 = vld [vmem:[%s3112_s9 + $0x68] sm:$0xff] }
 0x302   :  { %v1741_v49 = vld [vmem:[%s3112_s9 + $0x60] sm:$0xff] }
 0x303   :  { %2174 = vmatpush3.bf16.msra.mxu0 %v2173_v54  ;;  %v1433_v54 = vld [vmem:[%s3111_s8 + $0x170] sm:$0xff] }
 0x304   :  { %2176 = vmatprep.subr.bf16.mxu0 %v2175_v55  ;;  %2198 = vmatpush3.bf16.msra.mxu1 %v2197_v26  ;;  %v1434_v55 = vld [vmem:[%s3111_s8 + $0x178] sm:$0xff] }
 0x305   :  { %2200 = vmatprep.subr.bf16.mxu1 %v2199_v30  ;;  %v2217_v33 = vpack.c.bf16 %v1434_v55, %v1433_v54 }
 0x307   :  { %2178 = vmatpush3.bf16.msra.mxu0 %v2177_v57  ;;  %v2220_v57 = vpack.c.bf16 %v1452_v27, %v1451_v56 }
 0x308   :  { %2180 = vmatprep.subr.bf16.mxu0 %v2179_v58  ;;  %2202 = vmatpush3.bf16.msra.mxu1 %v2201_v34  ;;  %v1731_v34 = vld [vmem:[%s3112_s9 + $0x10] sm:$0xff] }
 0x309   :  { %2204 = vmatprep.subr.bf16.mxu1 %v2203_v37  ;;  %v2247_v37 = vpack.c.bf16 %v1732_v36, %v1731_v34 }
 0x30b   :  { %2182 = vmatpush3.bf16.msra.mxu0 %v2181_v42  ;;  %v1455_v42 = vld [vmem:[%s3111_s8 + $0x220] sm:$0xff] }
 0x30c   :  { %2184 = vmatprep.subr.bf16.mxu0 %v2183_v63  ;;  %2206 = vmatpush3.bf16.msra.mxu1 %v2205_v40  ;;  %v1456_v63 = vld [vmem:[%s3111_s8 + $0x228] sm:$0xff]  ;;  %v2251_v40 = vpack.c.bf16 %v1734_v39, %v1733_v38 }
 0x30d   :  { %2208 = vmatprep.subr.bf16.mxu1 %v2207_v44  ;;  %v2226_v2 = vpack.c.bf16 %v1456_v63, %v1455_v42  ;;  %v2255_v44 = vpack.c.bf16 %v1736_v43, %v1735_v41  ;;  %v1704_v63 = vpop.permute.xlu1 %1703 }
 0x30f   :  { %2186 = vmatpush3.bf16.msra.mxu0 %v2185_v3  ;;  %v1457_v3 = vld [vmem:[%s3111_s8 + $0x230] sm:$0xff] }
 0x310   :  { %2219 = vmatprep.subr.bf16.mxu0 %v2310_v11  ;;  %2210 = vmatpush3.bf16.msra.mxu1 %v2209_v7  ;;  %v2229_v8 = vpack.c.bf16 %v1458_v4, %v1457_v3  ;;  %v2259_v7 = vpack.c.bf16 %v1738_v46, %v1737_v45 }
 0x311   :  { %2212 = vmatprep.subr.bf16.mxu1 %v2211_v48  ;;  %v2263_v48 = vpack.c.bf16 %v1740_v47, %v1739_v5  ;;  %v1718_v12 = vpop.permute.xlu1 %1717 }
 0x314   :  { %2214 = vmatpush3.bf16.msra.mxu1 %v2213_v51  ;;  %v2267_v51 = vpack.c.bf16 %v1742_v50, %v1741_v49 }
 0x315   :  { %2216 = vmatprep.subr.bf16.mxu1 %v2215_v6  ;;  %v2271_v6 = vpack.c.bf16 %v1744_v53, %v1743_v52 }
 0x318   :  { %2218 = vmatpush3.bf16.msra.mxu1 %v2217_v33 }
 0x319   :  { %2244 = vmatprep.subr.bf16.mxu1 %v2243_v35 }
 0x396   :  { %v1222_v14 = vpop.f32.mrb[2].mxu1 }
 0x397   :  { %v1224_v58 = vpop.f32.mrb[3].mxu1 }
 0x398   :  { %1538 = vmatprep.mubr.f32.mxu0 %v1224_v58 }
 0x399   :  { %1539 = vmatmul.mubr.f32.vlgmr.msra.gmra.mrb[8].mxu0 %v1222_v14 }
 0x39a   :  { %2221 = vmatpush1.bf16.msra.mxu0 %v2220_v57  ;;  %v1228_v62 = vpop.f32.mrb[4].mxu1 }
 0x39b   :  { %2222 = vmatprep.subr.bf16.mxu0 %v2310_v11  ;;  %v1230_v0 = vpop.f32.mrb[5].mxu1 }
 0x39c   :  { %1543 = vmatprep.mubr.f32.mxu0 %v1230_v0 }
 0x39d   :  { %1544 = vmatmul.mubr.f32.gmra.mrb[10].mxu0 %v1228_v62 }
 0x39e   :  { %2224 = vmatpush1.bf16.msra.mxu0 %v2223_v61 }
 0x39f   :  { %2225 = vmatprep.subr.bf16.mxu0 %v2310_v11 }
 0x3a2   :  { %2227 = vmatpush1.bf16.msra.mxu0 %v2226_v2 }
 0x3a3   :  { %2228 = vmatprep.subr.bf16.mxu0 %v2310_v11 }
 0x3a6   :  { %2230 = vmatpush1.bf16.msra.mxu0 %v2229_v8  ;;  %v1709_v8 = vpop.permute.xlu0 %1708 }
 0x3a7   :  { %2231 = vmatprep.subr.bf16.mxu0 %v2310_v11 }
 0x3aa   :  { %2233 = vmatpush1.bf16.msra.mxu0 %v2232_v13 }
 0x3ab   :  { %2234 = vmatprep.subr.bf16.mxu0 %v2310_v11 }
 0x3ae   :  { %2236 = vmatpush1.bf16.msra.mxu0 %v2235_v16 }
 0x3af   :  { %2237 = vmatprep.subr.bf16.mxu0 %v2310_v11 }
 0x3b2   :  { %2239 = vmatpush1.bf16.msra.mxu0 %v2238_v19  ;;  %v1723_v19 = vpop.permute.xlu0 %1722 }
 0x3b3   :  { %2240 = vmatprep.subr.bf16.mxu0 %v2310_v11 }
 0x3b6   :  { %2242 = vmatpush1.bf16.msra.mxu0 %v2241_v22  ;;  %v1820_v22 = vld [vmem:[%s3113_s10] sm:$0xff] }
 0x3b7   :  { %1656 = vmatprep.subr.mxu0 %v2307_v9 }
 0x3ba   :  { %1657 = vmatpush1.msra.mxu0 %v1467_v23 }
 0x3c4   :  { %v1299_v24 = vpop.f32.mrb[4].mxu0 }
 0x3c5   :  { %v1301_v25 = vpop.f32.mrb[5].mxu0 }
 0x3c6   :  { %1613 = vmatprep.mubr.f32.mxu1 %v1301_v25 }
 0x3c7   :  { %1614 = vmatmul.mubr.f32.vlgmr.msra.gmra.mrb[10].mxu1 %v1299_v24 }
 0x3c8   :  { %v1305_v26 = vpop.f32.mrb[6].mxu0  ;;  %2246 = vmatpush3.bf16.msra.mxu1 %v2243_v35 }
 0x3c9   :  { %v1307_v28 = vpop.f32.mrb[7].mxu0  ;;  %2248 = vmatprep.subr.bf16.mxu1 %v2247_v37 }
 0x3ca   :  { %1618 = vmatprep.mubr.f32.mxu1 %v1307_v28  ;;  %v1832_v28 = vpop.permute.xlu0 %1831 }
 0x3cb   :  { %1619 = vmatmul.mubr.f32.gmra.mrb[12].mxu1 %v1305_v26  ;;  %v1821_v26 = vld [vmem:[%s3113_s10 + $0x8] sm:$0x3] }
 0x3cc   :  { %2250 = vmatpush3.bf16.msra.mxu1 %v2247_v37 }
 0x3cd   :  { %v1376_v29 = vpop.f32.mrb[6].mxu1  ;;  %2252 = vmatprep.subr.bf16.mxu1 %v2251_v40 }
 0x3ce   :  { %v1378_v30 = vpop.f32.mrb[7].mxu1 }
 0x3cf   :  { %1939 = vmatprep.mubr.msk.f32.mxu0 %vm763_vm15, %v1378_v30  ;;  %v1827_v30 = vpop.permute.xlu1 %1826 }
 0x3d0   :  { %1689 = vmatmul.mubr.f32.vlgmr.msra.gmra.mrb[12].mxu0 %v1376_v29  ;;  %2254 = vmatpush3.bf16.msra.mxu1 %v2251_v40 }
 0x3d1   :  { %v1382_v11 = vpop.f32.mrb[8].mxu1  ;;  %2256 = vmatprep.subr.bf16.mxu1 %v2255_v44 }
 0x3d2   :  { %v1384_v9 = vpop.f32.mrb[9].mxu1 }
 0x3d3   :  { %1940 = vmatprep.mubr.msk.f32.mxu0 %vm763_vm15, %v1384_v9 }
 0x3d4   :  { %1694 = vmatmul.mubr.f32.gmra.mrb[14].mxu0 %v1382_v11  ;;  %2258 = vmatpush3.bf16.msra.mxu1 %v2255_v44 }
 0x3d5   :  { %2260 = vmatprep.subr.bf16.mxu1 %v2259_v7  ;;  %2080 = vmatprep.mubr.msk.f32.mxu0 %vm1834_vm1, %v1820_v22 }
 0x3d8   :  { %2262 = vmatpush3.bf16.msra.mxu1 %v2259_v7 }
 0x3d9   :  { %2264 = vmatprep.subr.bf16.mxu1 %v2263_v48 }
 0x3dc   :  { %2266 = vmatpush3.bf16.msra.mxu1 %v2263_v48 }
 0x3dd   :  { %2268 = vmatprep.subr.bf16.mxu1 %v2267_v51 }
 0x3e0   :  { %2270 = vmatpush3.bf16.msra.mxu1 %v2267_v51 }
 0x3e1   :  { %2272 = vmatprep.subr.bf16.mxu1 %v2271_v6 }
 0x3e4   :  { %2274 = vmatpush3.bf16.msra.mxu1 %v2271_v6 }
 0x46c   :  { %v1975_v54 = vpop.f32.mrb[8].mxu0 }
 0x46d   :  { %v1976_v55 = vpop.f32.mrb[9].mxu0 }
 0x46e   :  { %v1977_v33 = vadd.f32 %v1976_v55, %v1975_v54 }
 0x470   :  { %v1978_v56 = vpop.f32.mrb[10].mxu0 }
 0x471   :  { %v1979_v27 = vpop.f32.mrb[11].mxu0 }
 0x472   :  { %v1980_v14 = vadd.f32 %v1979_v27, %v1978_v56 }
 0x49a   :  { %v2013_v57 = vpop.f32.mrb[10].mxu1 }
 0x49b   :  { %v2014_v58 = vpop.f32.mrb[11].mxu1 }
 0x49c   :  { %v2015_v59 = vadd.f32 %v2014_v58, %v2013_v57 }
 0x49e   :  { %v1616_v60 = vadd.f32 %v2015_v59, %v1977_v33  ;;  %v2016_v61 = vpop.f32.mrb[12].mxu1 }
 0x49f   :  { %v2017_v62 = vpop.f32.mrb[13].mxu1 }
 0x4a0   :  { %v2018_v42 = vadd.f32 %v2017_v62, %v2016_v61 }
 0x4a2   :  { %v1621_v0 = vadd.f32 %v2018_v42, %v1980_v14 }
 0x4a3   :  { %v1690_v2 = vpop.f32.mrb[12].mxu0 }
 0x4a4   :  { %v1691_v3 = vadd.f32 %v1690_v2, %v1616_v60  ;;  %v1692_v4 = vpop.f32.mrb[13].mxu0 }
 0x4a6   :  { %v1711_v10 = vmul.f32 %v1704_v63, %v1691_v3 }
 0x4a7   :  { %v1695_v13 = vpop.f32.mrb[14].mxu0 }
 0x4a8   :  { %v1696_v1 = vadd.f32 %v1695_v13, %v1621_v0  ;;  %v1697_v15 = vpop.f32.mrb[15].mxu0  ;;  %v1725_v16 = vadd.f32 %v1718_v12, %v1711_v10 }
 0x4aa   :  { %v1712_v17 = vmul.f32 %v1709_v8, %v1696_v1  ;;  %v1727_v18 = vmax.f32 %v1725_v16, 0.0 }
 0x4ac   :  { %v1726_v20 = vadd.f32 %v1723_v19, %v1712_v17  ;;  %2073 = vmatprep.mubr.f32.mxu1 %v1727_v18 }
 0x4ae   :  { %v1728_v21 = vmax.f32 %v1726_v20, 0.0 }
 0x4b0   :  { %2074 = vmatmul.mubr.f32.vlgmr.msra.gmra.mrb[14].mxu1 %v1728_v21 }
 0x583   :  { %v2075_v23 = vpop.f32.mrb[14].mxu1 }
 0x584   :  { %v1811_v24 = vpop.f32.mrb[15].mxu1 }
 0x585   :  { %v2275_v25 = vpack.c.bf16 %v2075_v23, %v1811_v24 }
 0x587   :  { %2276 = vmatprep.subr.bf16.mxu0 %v2275_v25 }
 0x588   :  { %2278 = vmatpush3.bf16.msra.mxu0 %v2275_v25 }
 0x58b   :  { %2081 = vmatmul.mubr.msk.f32.vlgmr.msra.gmra.mrb[16].mxu0 %vm1834_vm1, %v1821_v26 }
 0x65e   :  { %v2082_v29 = vpop.f32.mrb[16].mxu0 }
 0x65f   :  { %v1913_v11 = vadd.f32 %v2082_v29, %v1832_v28  ;;  %v1907_v9 = vpop.f32.mrb[17].mxu0 }
 0x660   :  { %v1908_v31 = vadd.f32 %v1907_v9, %v1827_v30 }
 0x661   :  { %1919 = vst.msk [vmem:[%s3114_s12 + $0x8] sm:$0x3] %vm1918_vm2, %v1913_v11 }
 0x662   :  { %1917 = vst.msk [vmem:[%s3114_s12] sm:$0xff] %vm1916_vm3, %v1908_v31 }

</bundles_post_ra>
